<compile_context>
chip_gen: v7x
topology: tpu7x:2x2x1
jax: 0.10.0
libtpu: 0.0.40
codegen_flags: <defaults>
</compile_context>

<pallas_src>
import math

import jax
import jax.numpy as jnp
from jax.experimental import pallas as pl
from jax.experimental.pallas import tpu as pltpu


def _full_spec(shape):
    # Whole-array block (block == full array dims satisfies TPU tiling rules).
    return pl.BlockSpec(shape, lambda *_: (0,) * len(shape))


def _banded_weight(w_conv, w_blk):
    """Fold the 3 horizontal taps + x zero-padding of a 3x3 conv into banded
    matrices.

    w_conv: (Cout, Cin, 3, 3) f32.
    Returns (3, w_blk*Cin, w_blk*Cout) bf16, one banded matrix per kernel row:
      B[ky][(x+kx-1)*Cin + ci, x*Cout + co] = w_conv[co, ci, ky, kx]
    (entries with x+kx-1 outside [0, w_blk) are absent -> implicit x padding).
    """
    cout, cin = w_conv.shape[0], w_conv.shape[1]
    wk = jnp.transpose(w_conv, (2, 3, 1, 0)).astype(jnp.float32)  # (ky,kx,cin,cout)
    bands = []
    for ky in range(3):
        b = jnp.zeros((w_blk * cin, w_blk * cout), jnp.float32)
        for kx in range(3):
            # sel[xi, x] = 1 iff xi == x + kx - 1
            sel = jnp.eye(w_blk, w_blk, k=1 - kx, dtype=jnp.float32)
            b = b + jnp.kron(sel, wk[ky, kx])
        bands.append(b)
    return jnp.stack(bands, axis=0).astype(jnp.bfloat16)


def _make_kernel(N, H, W, couts):
    """Fused 4-block kernel. Activations use the (y*N+n, x*C+c) 2-D layout."""

    def block(act, w_ref, gb_ref, gidx, h, w, cout):
        # act: (h*N, w*cin) bf16.  Returns (h//2*N, w//2*cout) f32 (post pool).
        L = act.shape[1]
        M = h * N
        zrow = jnp.zeros((N, L), act.dtype)
        # Vertical taps = row shifts of the (implicitly y-padded) slab.
        lhs = (
            jnp.concatenate([zrow, act[: (h - 1) * N, :]], axis=0),  # ky = 0
            act,                                                     # ky = 1
            jnp.concatenate([act[N:, :], zrow], axis=0),             # ky = 2
        )
        # 3 lane-dense banded matmuls (bf16 in, f32 accumulate).
        acc = jnp.dot(lhs[0], w_ref[0], preferred_element_type=jnp.float32)
        acc = acc + jnp.dot(lhs[1], w_ref[1], preferred_element_type=jnp.float32)
        acc = acc + jnp.dot(lhs[2], w_ref[2], preferred_element_type=jnp.float32)

        # BatchNorm (training-mode batch stats) + ReLU.
        # Channel co lives at lanes x*cout + co; fold the x groups.
        inv_cnt = 1.0 / float(M * w)
        s1 = jnp.sum(acc, axis=0, keepdims=True)          # (1, w*cout)
        s2 = jnp.sum(acc * acc, axis=0, keepdims=True)
        ch_sum = s1[:, 0:cout]
        ch_sq = s2[:, 0:cout]
        for x in range(1, w):
            ch_sum = ch_sum + s1[:, x * cout:(x + 1) * cout]
            ch_sq = ch_sq + s2[:, x * cout:(x + 1) * cout]
        mean = ch_sum * inv_cnt
        var = ch_sq * inv_cnt - mean * mean               # biased (PyTorch norm)
        gamma = gb_ref[2 * gidx:2 * gidx + 1, 0:cout]
        beta = gb_ref[2 * gidx + 1:2 * gidx + 2, 0:cout]
        scale = gamma * jax.lax.rsqrt(var + 1e-5)         # (1, cout)
        shift = beta - mean * scale
        scale_l = jnp.concatenate([scale] * w, axis=1)    # (1, w*cout)
        shift_l = jnp.concatenate([shift] * w, axis=1)
        y = jnp.maximum(acc * scale_l + shift_l, 0.0)     # BN + ReLU in one pass

        # MaxPool2d(2): pair-select rows (y) then lane groups (x).
        rows = []
        for yo in range(h // 2):
            r0 = y[(2 * yo) * N:(2 * yo + 1) * N, :]
            r1 = y[(2 * yo + 1) * N:(2 * yo + 2) * N, :]
            rows.append(jnp.maximum(r0, r1))
        rp = rows[0] if len(rows) == 1 else jnp.concatenate(rows, axis=0)
        cols = []
        for xo in range(w // 2):
            c0 = rp[:, (2 * xo) * cout:(2 * xo + 1) * cout]
            c1 = rp[:, (2 * xo + 1) * cout:(2 * xo + 2) * cout]
            cols.append(jnp.maximum(c0, c1))
        return cols[0] if len(cols) == 1 else jnp.concatenate(cols, axis=1)

    def kernel(x_ref, w1_ref, w2_ref, w3_ref, w4_ref, gb_ref, out_ref):
        a = block(x_ref[...], w1_ref, gb_ref, 0, H, W, couts[0])
        a = block(a.astype(jnp.bfloat16), w2_ref, gb_ref, 1, H // 2, W // 2, couts[1])
        a = block(a.astype(jnp.bfloat16), w3_ref, gb_ref, 2, H // 4, W // 4, couts[2])
        a = block(a.astype(jnp.bfloat16), w4_ref, gb_ref, 3, H // 8, W // 8, couts[3])
        out_ref[...] = a

    return kernel


def omniglot_net_forward(x_nchw, params):
    """Forward pass of OmniglotNet. x_nchw: (N, C, H, W) f32.

    params: list of 4 tuples (conv_w (Cout,Cin,3,3), conv_b, bn_gamma, bn_beta).
    Returns (N, z_dim * (H//16) * (W//16)) features (PyTorch x.view(N, -1)).
    """
    N, Cin, H, W = x_nchw.shape
    assert H % 16 == 0 and W % 16 == 0, "need 4 levels of 2x2 pooling"

    # NCHW -> (H, N, W, C) -> 2-D (H*N, W*C): rows = y*N+n, lanes = x*C+c.
    x2d = jnp.transpose(x_nchw, (2, 0, 3, 1)).reshape(H * N, W * Cin)
    x2d = x2d.astype(jnp.bfloat16)

    couts = [p[0].shape[0] for p in params]
    widths = [W, W // 2, W // 4, W // 8]
    bands = [_banded_weight(params[i][0], widths[i]) for i in range(4)]
    # conv bias params[i][1] intentionally unused: cancelled exactly by the
    # training-mode BN batch-mean subtraction.

    cmax = max(couts)
    gb_rows = []
    for (_, _, g, be) in params:
        gb_rows.append(jnp.pad(g.astype(jnp.float32), (0, cmax - g.shape[0])))
        gb_rows.append(jnp.pad(be.astype(jnp.float32), (0, cmax - be.shape[0])))
    gb = jnp.stack(gb_rows, axis=0)                       # (8, cmax)

    Hf, Wf = H // 16, W // 16
    out_shape = jax.ShapeDtypeStruct((Hf * N, Wf * couts[3]), jnp.float32)

    out2d = pl.pallas_call(
        _make_kernel(N, H, W, tuple(couts)),
        out_shape=out_shape,
        grid=(1,),
        in_specs=[_full_spec(x2d.shape)]
                 + [_full_spec(b.shape) for b in bands]
                 + [_full_spec(gb.shape)],
        out_specs=_full_spec(out_shape.shape),
        compiler_params=pltpu.CompilerParams(
            dimension_semantics=("arbitrary",)),
    )(x2d, bands[0], bands[1], bands[2], bands[3], gb)

    # (Hf*N, Wf*C) -> NCHW feature map -> x.view(N, -1) ordering.
    feat = out2d.reshape(Hf, N, Wf, couts[3])
    feat = jnp.transpose(feat, (1, 3, 0, 2))              # (N, C, Hf, Wf)
    return feat.reshape(N, -1)


def init_params(key, x_dim=1, hid_dim=32, z_dim=32):
    """Deterministic parameter init mirroring nn.Conv2d / nn.BatchNorm2d defaults."""
    dims = [(x_dim, hid_dim), (hid_dim, hid_dim), (hid_dim, hid_dim), (hid_dim, z_dim)]
    params = []
    for (cin, cout) in dims:
        key, kw, kb = jax.random.split(key, 3)
        fan_in = cin * 3 * 3
        bound = 1.0 / math.sqrt(fan_in)
        w = jax.random.uniform(kw, (cout, cin, 3, 3), jnp.float32, -bound, bound)
        b = jax.random.uniform(kb, (cout,), jnp.float32, -bound, bound)
        gamma = jnp.ones((cout,), jnp.float32)   # BN default init
        beta = jnp.zeros((cout,), jnp.float32)
        params.append((w, b, gamma, beta))
    return params


if __name__ == "__main__":
    key = jax.random.PRNGKey(0)
    kx, kp = jax.random.split(key)

    # Omniglot-style 1-channel input: 16 -> 8 -> 4 -> 2 -> 1 after 4 pools.
    N, C, H, W = 2, 1, 16, 16
    hid_dim = z_dim = 32

    x = jax.random.normal(kx, (N, C, H, W), jnp.float32)   # NCHW (PyTorch layout)
    params = init_params(kp, x_dim=C, hid_dim=hid_dim, z_dim=z_dim)

    fwd = jax.jit(omniglot_net_forward)
    out = jax.block_until_ready(fwd(x, params))

    assert out.shape == (N, z_dim * (H // 16) * (W // 16)), out.shape
    assert bool(jnp.all(jnp.isfinite(out)))
    print("KERNEL_OK")
</pallas_src>

<mosaic_0001>
module attributes {stable_mosaic.version = 11 : i64} {
  func.func @kernel(%arg0: i32, %arg1: memref<32x16xbf16, #tpu.memory_space<vmem>>, %arg2: memref<3x16x512xbf16, #tpu.memory_space<vmem>>, %arg3: memref<3x256x256xbf16, #tpu.memory_space<vmem>>, %arg4: memref<3x128x128xbf16, #tpu.memory_space<vmem>>, %arg5: memref<3x64x64xbf16, #tpu.memory_space<vmem>>, %arg6: memref<8x32xf32, #tpu.memory_space<vmem>>, %arg7: memref<2x32xf32, #tpu.memory_space<vmem>>) attributes {dimension_semantics = [#tpu.dimension_semantics<arbitrary>], iteration_bounds = array<i64: 1>, scalar_prefetch = 0 : i64, scratch_operands = 0 : i64, tpu.core_type = #tpu.core_type<tc>, window_params = [{pipeline_mode = #tpu.pipeline_mode<synchronous>, transform_indices = @transform_0, window_bounds = array<i64: 32, 16>}, {pipeline_mode = #tpu.pipeline_mode<synchronous>, transform_indices = @transform_1, window_bounds = array<i64: 3, 16, 512>}, {pipeline_mode = #tpu.pipeline_mode<synchronous>, transform_indices = @transform_2, window_bounds = array<i64: 3, 256, 256>}, {pipeline_mode = #tpu.pipeline_mode<synchronous>, transform_indices = @transform_3, window_bounds = array<i64: 3, 128, 128>}, {pipeline_mode = #tpu.pipeline_mode<synchronous>, transform_indices = @transform_4, window_bounds = array<i64: 3, 64, 64>}, {pipeline_mode = #tpu.pipeline_mode<synchronous>, transform_indices = @transform_5, window_bounds = array<i64: 8, 32>}, {pipeline_mode = #tpu.pipeline_mode<synchronous>, transform_indices = @transform_6, window_bounds = array<i64: 2, 32>}]} {
    %c0 = arith.constant 0 : index
    %c0_0 = arith.constant 0 : index
    %0 = vector.load %arg1[%c0, %c0_0] : memref<32x16xbf16, #tpu.memory_space<vmem>>, vector<32x16xbf16>
    %cst = arith.constant 0.000000e+00 : bf16
    %1 = vector.broadcast %cst : bf16 to vector<2x16xbf16>
    %2 = vector.extract_strided_slice %0 {offsets = [0, 0], sizes = [30, 16], strides = [1, 1]} : vector<32x16xbf16> to vector<30x16xbf16>
    %3 = tpu.concatenate %1, %2 in 0 : vector<2x16xbf16>, vector<30x16xbf16> -> vector<32x16xbf16>
    %4 = vector.extract_strided_slice %0 {offsets = [2, 0], sizes = [30, 16], strides = [1, 1]} : vector<32x16xbf16> to vector<30x16xbf16>
    %5 = tpu.concatenate %4, %1 in 0 : vector<30x16xbf16>, vector<2x16xbf16> -> vector<32x16xbf16>
    %c0_1 = arith.constant 0 : index
    %c0_2 = arith.constant 0 : index
    %c0_3 = arith.constant 0 : index
    %6 = vector.load %arg2[%c0_1, %c0_2, %c0_3] : memref<3x16x512xbf16, #tpu.memory_space<vmem>>, vector<1x16x512xbf16>
    %7 = vector.shape_cast %6 : vector<1x16x512xbf16> to vector<16x512xbf16>
    %cst_4 = arith.constant dense<0.000000e+00> : vector<32x512xf32>
    %8 = tpu.matmul %3, %7, %cst_4 {dimension_numbers = #tpu.dot_dimension_numbers<[1], [0], [0], [1], [0, 0, 1, 1], [], []>} : vector<32x16xbf16>, vector<16x512xbf16>, vector<32x512xf32> -> vector<32x512xf32>
    %c1 = arith.constant 1 : index
    %c0_5 = arith.constant 0 : index
    %c0_6 = arith.constant 0 : index
    %9 = vector.load %arg2[%c1, %c0_5, %c0_6] : memref<3x16x512xbf16, #tpu.memory_space<vmem>>, vector<1x16x512xbf16>
    %10 = vector.shape_cast %9 : vector<1x16x512xbf16> to vector<16x512xbf16>
    %cst_7 = arith.constant dense<0.000000e+00> : vector<32x512xf32>
    %11 = tpu.matmul %0, %10, %cst_7 {dimension_numbers = #tpu.dot_dimension_numbers<[1], [0], [0], [1], [0, 0, 1, 1], [], []>} : vector<32x16xbf16>, vector<16x512xbf16>, vector<32x512xf32> -> vector<32x512xf32>
    %12 = arith.addf %8, %11 : vector<32x512xf32>
    %c2 = arith.constant 2 : index
    %c0_8 = arith.constant 0 : index
    %c0_9 = arith.constant 0 : index
    %13 = vector.load %arg2[%c2, %c0_8, %c0_9] : memref<3x16x512xbf16, #tpu.memory_space<vmem>>, vector<1x16x512xbf16>
    %14 = vector.shape_cast %13 : vector<1x16x512xbf16> to vector<16x512xbf16>
    %cst_10 = arith.constant dense<0.000000e+00> : vector<32x512xf32>
    %15 = tpu.matmul %5, %14, %cst_10 {dimension_numbers = #tpu.dot_dimension_numbers<[1], [0], [0], [1], [0, 0, 1, 1], [], []>} : vector<32x16xbf16>, vector<16x512xbf16>, vector<32x512xf32> -> vector<32x512xf32>
    %16 = arith.addf %12, %15 : vector<32x512xf32>
    %cst_11 = arith.constant dense<0.000000e+00> : vector<512xf32>
    %17 = vector.multi_reduction <add>, %16, %cst_11 [0] : vector<32x512xf32> to vector<512xf32>
    %18 = vector.shape_cast %17 : vector<512xf32> to vector<1x512xf32>
    %19 = arith.mulf %16, %16 : vector<32x512xf32>
    %cst_12 = arith.constant dense<0.000000e+00> : vector<512xf32>
    %20 = vector.multi_reduction <add>, %19, %cst_12 [0] : vector<32x512xf32> to vector<512xf32>
    %21 = vector.shape_cast %20 : vector<512xf32> to vector<1x512xf32>
    %22 = vector.extract_strided_slice %18 {offsets = [0, 0], sizes = [1, 32], strides = [1, 1]} : vector<1x512xf32> to vector<1x32xf32>
    %23 = vector.extract_strided_slice %21 {offsets = [0, 0], sizes = [1, 32], strides = [1, 1]} : vector<1x512xf32> to vector<1x32xf32>
    %24 = vector.extract_strided_slice %18 {offsets = [0, 32], sizes = [1, 32], strides = [1, 1]} : vector<1x512xf32> to vector<1x32xf32>
    %25 = arith.addf %22, %24 : vector<1x32xf32>
    %26 = vector.extract_strided_slice %21 {offsets = [0, 32], sizes = [1, 32], strides = [1, 1]} : vector<1x512xf32> to vector<1x32xf32>
    %27 = arith.addf %23, %26 : vector<1x32xf32>
    %28 = vector.extract_strided_slice %18 {offsets = [0, 64], sizes = [1, 32], strides = [1, 1]} : vector<1x512xf32> to vector<1x32xf32>
    %29 = arith.addf %25, %28 : vector<1x32xf32>
    %30 = vector.extract_strided_slice %21 {offsets = [0, 64], sizes = [1, 32], strides = [1, 1]} : vector<1x512xf32> to vector<1x32xf32>
    %31 = arith.addf %27, %30 : vector<1x32xf32>
    %32 = vector.extract_strided_slice %18 {offsets = [0, 96], sizes = [1, 32], strides = [1, 1]} : vector<1x512xf32> to vector<1x32xf32>
    %33 = arith.addf %29, %32 : vector<1x32xf32>
    %34 = vector.extract_strided_slice %21 {offsets = [0, 96], sizes = [1, 32], strides = [1, 1]} : vector<1x512xf32> to vector<1x32xf32>
    %35 = arith.addf %31, %34 : vector<1x32xf32>
    %36 = vector.extract_strided_slice %18 {offsets = [0, 128], sizes = [1, 32], strides = [1, 1]} : vector<1x512xf32> to vector<1x32xf32>
    %37 = arith.addf %33, %36 : vector<1x32xf32>
    %38 = vector.extract_strided_slice %21 {offsets = [0, 128], sizes = [1, 32], strides = [1, 1]} : vector<1x512xf32> to vector<1x32xf32>
    %39 = arith.addf %35, %38 : vector<1x32xf32>
    %40 = vector.extract_strided_slice %18 {offsets = [0, 160], sizes = [1, 32], strides = [1, 1]} : vector<1x512xf32> to vector<1x32xf32>
    %41 = arith.addf %37, %40 : vector<1x32xf32>
    %42 = vector.extract_strided_slice %21 {offsets = [0, 160], sizes = [1, 32], strides = [1, 1]} : vector<1x512xf32> to vector<1x32xf32>
    %43 = arith.addf %39, %42 : vector<1x32xf32>
    %44 = vector.extract_strided_slice %18 {offsets = [0, 192], sizes = [1, 32], strides = [1, 1]} : vector<1x512xf32> to vector<1x32xf32>
    %45 = arith.addf %41, %44 : vector<1x32xf32>
    %46 = vector.extract_strided_slice %21 {offsets = [0, 192], sizes = [1, 32], strides = [1, 1]} : vector<1x512xf32> to vector<1x32xf32>
    %47 = arith.addf %43, %46 : vector<1x32xf32>
    %48 = vector.extract_strided_slice %18 {offsets = [0, 224], sizes = [1, 32], strides = [1, 1]} : vector<1x512xf32> to vector<1x32xf32>
    %49 = arith.addf %45, %48 : vector<1x32xf32>
    %50 = vector.extract_strided_slice %21 {offsets = [0, 224], sizes = [1, 32], strides = [1, 1]} : vector<1x512xf32> to vector<1x32xf32>
    %51 = arith.addf %47, %50 : vector<1x32xf32>
    %52 = vector.extract_strided_slice %18 {offsets = [0, 256], sizes = [1, 32], strides = [1, 1]} : vector<1x512xf32> to vector<1x32xf32>
    %53 = arith.addf %49, %52 : vector<1x32xf32>
    %54 = vector.extract_strided_slice %21 {offsets = [0, 256], sizes = [1, 32], strides = [1, 1]} : vector<1x512xf32> to vector<1x32xf32>
    %55 = arith.addf %51, %54 : vector<1x32xf32>
    %56 = vector.extract_strided_slice %18 {offsets = [0, 288], sizes = [1, 32], strides = [1, 1]} : vector<1x512xf32> to vector<1x32xf32>
    %57 = arith.addf %53, %56 : vector<1x32xf32>
    %58 = vector.extract_strided_slice %21 {offsets = [0, 288], sizes = [1, 32], strides = [1, 1]} : vector<1x512xf32> to vector<1x32xf32>
    %59 = arith.addf %55, %58 : vector<1x32xf32>
    %60 = vector.extract_strided_slice %18 {offsets = [0, 320], sizes = [1, 32], strides = [1, 1]} : vector<1x512xf32> to vector<1x32xf32>
    %61 = arith.addf %57, %60 : vector<1x32xf32>
    %62 = vector.extract_strided_slice %21 {offsets = [0, 320], sizes = [1, 32], strides = [1, 1]} : vector<1x512xf32> to vector<1x32xf32>
    %63 = arith.addf %59, %62 : vector<1x32xf32>
    %64 = vector.extract_strided_slice %18 {offsets = [0, 352], sizes = [1, 32], strides = [1, 1]} : vector<1x512xf32> to vector<1x32xf32>
    %65 = arith.addf %61, %64 : vector<1x32xf32>
    %66 = vector.extract_strided_slice %21 {offsets = [0, 352], sizes = [1, 32], strides = [1, 1]} : vector<1x512xf32> to vector<1x32xf32>
    %67 = arith.addf %63, %66 : vector<1x32xf32>
    %68 = vector.extract_strided_slice %18 {offsets = [0, 384], sizes = [1, 32], strides = [1, 1]} : vector<1x512xf32> to vector<1x32xf32>
    %69 = arith.addf %65, %68 : vector<1x32xf32>
    %70 = vector.extract_strided_slice %21 {offsets = [0, 384], sizes = [1, 32], strides = [1, 1]} : vector<1x512xf32> to vector<1x32xf32>
    %71 = arith.addf %67, %70 : vector<1x32xf32>
    %72 = vector.extract_strided_slice %18 {offsets = [0, 416], sizes = [1, 32], strides = [1, 1]} : vector<1x512xf32> to vector<1x32xf32>
    %73 = arith.addf %69, %72 : vector<1x32xf32>
    %74 = vector.extract_strided_slice %21 {offsets = [0, 416], sizes = [1, 32], strides = [1, 1]} : vector<1x512xf32> to vector<1x32xf32>
    %75 = arith.addf %71, %74 : vector<1x32xf32>
    %76 = vector.extract_strided_slice %18 {offsets = [0, 448], sizes = [1, 32], strides = [1, 1]} : vector<1x512xf32> to vector<1x32xf32>
    %77 = arith.addf %73, %76 : vector<1x32xf32>
    %78 = vector.extract_strided_slice %21 {offsets = [0, 448], sizes = [1, 32], strides = [1, 1]} : vector<1x512xf32> to vector<1x32xf32>
    %79 = arith.addf %75, %78 : vector<1x32xf32>
    %80 = vector.extract_strided_slice %18 {offsets = [0, 480], sizes = [1, 32], strides = [1, 1]} : vector<1x512xf32> to vector<1x32xf32>
    %81 = arith.addf %77, %80 : vector<1x32xf32>
    %82 = vector.extract_strided_slice %21 {offsets = [0, 480], sizes = [1, 32], strides = [1, 1]} : vector<1x512xf32> to vector<1x32xf32>
    %83 = arith.addf %79, %82 : vector<1x32xf32>
    %cst_13 = arith.constant 0.001953125 : f32
    %84 = vector.broadcast %cst_13 : f32 to vector<1x32xf32>
    %85 = arith.mulf %81, %84 : vector<1x32xf32>
    %cst_14 = arith.constant 0.001953125 : f32
    %86 = vector.broadcast %cst_14 : f32 to vector<1x32xf32>
    %87 = arith.mulf %83, %86 : vector<1x32xf32>
    %88 = arith.mulf %85, %85 : vector<1x32xf32>
    %89 = arith.subf %87, %88 : vector<1x32xf32>
    %c0_15 = arith.constant 0 : index
    %c0_16 = arith.constant 0 : index
    %90 = vector.load %arg6[%c0_15, %c0_16] : memref<8x32xf32, #tpu.memory_space<vmem>>, vector<1x32xf32>
    %c1_17 = arith.constant 1 : index
    %c0_18 = arith.constant 0 : index
    %91 = vector.load %arg6[%c1_17, %c0_18] : memref<8x32xf32, #tpu.memory_space<vmem>>, vector<1x32xf32>
    %cst_19 = arith.constant 9.99999974E-6 : f32
    %92 = vector.broadcast %cst_19 : f32 to vector<1x32xf32>
    %93 = arith.addf %89, %92 : vector<1x32xf32>
    %94 = math.rsqrt %93 : vector<1x32xf32>
    %95 = arith.mulf %90, %94 : vector<1x32xf32>
    %96 = arith.mulf %85, %95 : vector<1x32xf32>
    %97 = arith.subf %91, %96 : vector<1x32xf32>
    %98 = tpu.concatenate %95, %95, %95, %95, %95, %95, %95, %95, %95, %95, %95, %95, %95, %95, %95, %95 in 1 : vector<1x32xf32>, vector<1x32xf32>, vector<1x32xf32>, vector<1x32xf32>, vector<1x32xf32>, vector<1x32xf32>, vector<1x32xf32>, vector<1x32xf32>, vector<1x32xf32>, vector<1x32xf32>, vector<1x32xf32>, vector<1x32xf32>, vector<1x32xf32>, vector<1x32xf32>, vector<1x32xf32>, vector<1x32xf32> -> vector<1x512xf32>
    %99 = tpu.concatenate %97, %97, %97, %97, %97, %97, %97, %97, %97, %97, %97, %97, %97, %97, %97, %97 in 1 : vector<1x32xf32>, vector<1x32xf32>, vector<1x32xf32>, vector<1x32xf32>, vector<1x32xf32>, vector<1x32xf32>, vector<1x32xf32>, vector<1x32xf32>, vector<1x32xf32>, vector<1x32xf32>, vector<1x32xf32>, vector<1x32xf32>, vector<1x32xf32>, vector<1x32xf32>, vector<1x32xf32>, vector<1x32xf32> -> vector<1x512xf32>
    %100 = vector.broadcast %98 : vector<1x512xf32> to vector<32x512xf32>
    %101 = arith.mulf %16, %100 : vector<32x512xf32>
    %102 = vector.broadcast %99 : vector<1x512xf32> to vector<32x512xf32>
    %103 = arith.addf %101, %102 : vector<32x512xf32>
    %cst_20 = arith.constant 0.000000e+00 : f32
    %104 = vector.broadcast %cst_20 : f32 to vector<32x512xf32>
    %105 = arith.maximumf %103, %104 : vector<32x512xf32>
    %106 = vector.extract_strided_slice %105 {offsets = [0, 0], sizes = [2, 512], strides = [1, 1]} : vector<32x512xf32> to vector<2x512xf32>
    %107 = vector.extract_strided_slice %105 {offsets = [2, 0], sizes = [2, 512], strides = [1, 1]} : vector<32x512xf32> to vector<2x512xf32>
    %108 = arith.maximumf %106, %107 : vector<2x512xf32>
    %109 = vector.extract_strided_slice %105 {offsets = [4, 0], sizes = [2, 512], strides = [1, 1]} : vector<32x512xf32> to vector<2x512xf32>
    %110 = vector.extract_strided_slice %105 {offsets = [6, 0], sizes = [2, 512], strides = [1, 1]} : vector<32x512xf32> to vector<2x512xf32>
    %111 = arith.maximumf %109, %110 : vector<2x512xf32>
    %112 = vector.extract_strided_slice %105 {offsets = [8, 0], sizes = [2, 512], strides = [1, 1]} : vector<32x512xf32> to vector<2x512xf32>
    %113 = vector.extract_strided_slice %105 {offsets = [10, 0], sizes = [2, 512], strides = [1, 1]} : vector<32x512xf32> to vector<2x512xf32>
    %114 = arith.maximumf %112, %113 : vector<2x512xf32>
    %115 = vector.extract_strided_slice %105 {offsets = [12, 0], sizes = [2, 512], strides = [1, 1]} : vector<32x512xf32> to vector<2x512xf32>
    %116 = vector.extract_strided_slice %105 {offsets = [14, 0], sizes = [2, 512], strides = [1, 1]} : vector<32x512xf32> to vector<2x512xf32>
    %117 = arith.maximumf %115, %116 : vector<2x512xf32>
    %118 = vector.extract_strided_slice %105 {offsets = [16, 0], sizes = [2, 512], strides = [1, 1]} : vector<32x512xf32> to vector<2x512xf32>
    %119 = vector.extract_strided_slice %105 {offsets = [18, 0], sizes = [2, 512], strides = [1, 1]} : vector<32x512xf32> to vector<2x512xf32>
    %120 = arith.maximumf %118, %119 : vector<2x512xf32>
    %121 = vector.extract_strided_slice %105 {offsets = [20, 0], sizes = [2, 512], strides = [1, 1]} : vector<32x512xf32> to vector<2x512xf32>
    %122 = vector.extract_strided_slice %105 {offsets = [22, 0], sizes = [2, 512], strides = [1, 1]} : vector<32x512xf32> to vector<2x512xf32>
    %123 = arith.maximumf %121, %122 : vector<2x512xf32>
    %124 = vector.extract_strided_slice %105 {offsets = [24, 0], sizes = [2, 512], strides = [1, 1]} : vector<32x512xf32> to vector<2x512xf32>
    %125 = vector.extract_strided_slice %105 {offsets = [26, 0], sizes = [2, 512], strides = [1, 1]} : vector<32x512xf32> to vector<2x512xf32>
    %126 = arith.maximumf %124, %125 : vector<2x512xf32>
    %127 = vector.extract_strided_slice %105 {offsets = [28, 0], sizes = [2, 512], strides = [1, 1]} : vector<32x512xf32> to vector<2x512xf32>
    %128 = vector.extract_strided_slice %105 {offsets = [30, 0], sizes = [2, 512], strides = [1, 1]} : vector<32x512xf32> to vector<2x512xf32>
    %129 = arith.maximumf %127, %128 : vector<2x512xf32>
    %130 = tpu.concatenate %108, %111, %114, %117, %120, %123, %126, %129 in 0 : vector<2x512xf32>, vector<2x512xf32>, vector<2x512xf32>, vector<2x512xf32>, vector<2x512xf32>, vector<2x512xf32>, vector<2x512xf32>, vector<2x512xf32> -> vector<16x512xf32>
    %131 = vector.extract_strided_slice %130 {offsets = [0, 0], sizes = [16, 32], strides = [1, 1]} : vector<16x512xf32> to vector<16x32xf32>
    %132 = vector.extract_strided_slice %130 {offsets = [0, 32], sizes = [16, 32], strides = [1, 1]} : vector<16x512xf32> to vector<16x32xf32>
    %133 = arith.maximumf %131, %132 : vector<16x32xf32>
    %134 = vector.extract_strided_slice %130 {offsets = [0, 64], sizes = [16, 32], strides = [1, 1]} : vector<16x512xf32> to vector<16x32xf32>
    %135 = vector.extract_strided_slice %130 {offsets = [0, 96], sizes = [16, 32], strides = [1, 1]} : vector<16x512xf32> to vector<16x32xf32>
    %136 = arith.maximumf %134, %135 : vector<16x32xf32>
    %137 = vector.extract_strided_slice %130 {offsets = [0, 128], sizes = [16, 32], strides = [1, 1]} : vector<16x512xf32> to vector<16x32xf32>
    %138 = vector.extract_strided_slice %130 {offsets = [0, 160], sizes = [16, 32], strides = [1, 1]} : vector<16x512xf32> to vector<16x32xf32>
    %139 = arith.maximumf %137, %138 : vector<16x32xf32>
    %140 = vector.extract_strided_slice %130 {offsets = [0, 192], sizes = [16, 32], strides = [1, 1]} : vector<16x512xf32> to vector<16x32xf32>
    %141 = vector.extract_strided_slice %130 {offsets = [0, 224], sizes = [16, 32], strides = [1, 1]} : vector<16x512xf32> to vector<16x32xf32>
    %142 = arith.maximumf %140, %141 : vector<16x32xf32>
    %143 = vector.extract_strided_slice %130 {offsets = [0, 256], sizes = [16, 32], strides = [1, 1]} : vector<16x512xf32> to vector<16x32xf32>
    %144 = vector.extract_strided_slice %130 {offsets = [0, 288], sizes = [16, 32], strides = [1, 1]} : vector<16x512xf32> to vector<16x32xf32>
    %145 = arith.maximumf %143, %144 : vector<16x32xf32>
    %146 = vector.extract_strided_slice %130 {offsets = [0, 320], sizes = [16, 32], strides = [1, 1]} : vector<16x512xf32> to vector<16x32xf32>
    %147 = vector.extract_strided_slice %130 {offsets = [0, 352], sizes = [16, 32], strides = [1, 1]} : vector<16x512xf32> to vector<16x32xf32>
    %148 = arith.maximumf %146, %147 : vector<16x32xf32>
    %149 = vector.extract_strided_slice %130 {offsets = [0, 384], sizes = [16, 32], strides = [1, 1]} : vector<16x512xf32> to vector<16x32xf32>
    %150 = vector.extract_strided_slice %130 {offsets = [0, 416], sizes = [16, 32], strides = [1, 1]} : vector<16x512xf32> to vector<16x32xf32>
    %151 = arith.maximumf %149, %150 : vector<16x32xf32>
    %152 = vector.extract_strided_slice %130 {offsets = [0, 448], sizes = [16, 32], strides = [1, 1]} : vector<16x512xf32> to vector<16x32xf32>
    %153 = vector.extract_strided_slice %130 {offsets = [0, 480], sizes = [16, 32], strides = [1, 1]} : vector<16x512xf32> to vector<16x32xf32>
    %154 = arith.maximumf %152, %153 : vector<16x32xf32>
    %155 = tpu.concatenate %133, %136, %139, %142, %145, %148, %151, %154 in 1 : vector<16x32xf32>, vector<16x32xf32>, vector<16x32xf32>, vector<16x32xf32>, vector<16x32xf32>, vector<16x32xf32>, vector<16x32xf32>, vector<16x32xf32> -> vector<16x256xf32>
    %156 = arith.truncf %155 : vector<16x256xf32> to vector<16x256xbf16>
    %cst_21 = arith.constant 0.000000e+00 : bf16
    %157 = vector.broadcast %cst_21 : bf16 to vector<2x256xbf16>
    %158 = vector.extract_strided_slice %156 {offsets = [0, 0], sizes = [14, 256], strides = [1, 1]} : vector<16x256xbf16> to vector<14x256xbf16>
    %159 = tpu.concatenate %157, %158 in 0 : vector<2x256xbf16>, vector<14x256xbf16> -> vector<16x256xbf16>
    %160 = vector.extract_strided_slice %156 {offsets = [2, 0], sizes = [14, 256], strides = [1, 1]} : vector<16x256xbf16> to vector<14x256xbf16>
    %161 = tpu.concatenate %160, %157 in 0 : vector<14x256xbf16>, vector<2x256xbf16> -> vector<16x256xbf16>
    %c0_22 = arith.constant 0 : index
    %c0_23 = arith.constant 0 : index
    %c0_24 = arith.constant 0 : index
    %162 = vector.load %arg3[%c0_22, %c0_23, %c0_24] : memref<3x256x256xbf16, #tpu.memory_space<vmem>>, vector<1x256x256xbf16>
    %163 = vector.shape_cast %162 : vector<1x256x256xbf16> to vector<256x256xbf16>
    %cst_25 = arith.constant dense<0.000000e+00> : vector<16x256xf32>
    %164 = tpu.matmul %159, %163, %cst_25 {dimension_numbers = #tpu.dot_dimension_numbers<[1], [0], [0], [1], [0, 0, 1, 1], [], []>} : vector<16x256xbf16>, vector<256x256xbf16>, vector<16x256xf32> -> vector<16x256xf32>
    %c1_26 = arith.constant 1 : index
    %c0_27 = arith.constant 0 : index
    %c0_28 = arith.constant 0 : index
    %165 = vector.load %arg3[%c1_26, %c0_27, %c0_28] : memref<3x256x256xbf16, #tpu.memory_space<vmem>>, vector<1x256x256xbf16>
    %166 = vector.shape_cast %165 : vector<1x256x256xbf16> to vector<256x256xbf16>
    %cst_29 = arith.constant dense<0.000000e+00> : vector<16x256xf32>
    %167 = tpu.matmul %156, %166, %cst_29 {dimension_numbers = #tpu.dot_dimension_numbers<[1], [0], [0], [1], [0, 0, 1, 1], [], []>} : vector<16x256xbf16>, vector<256x256xbf16>, vector<16x256xf32> -> vector<16x256xf32>
    %168 = arith.addf %164, %167 : vector<16x256xf32>
    %c2_30 = arith.constant 2 : index
    %c0_31 = arith.constant 0 : index
    %c0_32 = arith.constant 0 : index
    %169 = vector.load %arg3[%c2_30, %c0_31, %c0_32] : memref<3x256x256xbf16, #tpu.memory_space<vmem>>, vector<1x256x256xbf16>
    %170 = vector.shape_cast %169 : vector<1x256x256xbf16> to vector<256x256xbf16>
    %cst_33 = arith.constant dense<0.000000e+00> : vector<16x256xf32>
    %171 = tpu.matmul %161, %170, %cst_33 {dimension_numbers = #tpu.dot_dimension_numbers<[1], [0], [0], [1], [0, 0, 1, 1], [], []>} : vector<16x256xbf16>, vector<256x256xbf16>, vector<16x256xf32> -> vector<16x256xf32>
    %172 = arith.addf %168, %171 : vector<16x256xf32>
    %cst_34 = arith.constant dense<0.000000e+00> : vector<256xf32>
    %173 = vector.multi_reduction <add>, %172, %cst_34 [0] : vector<16x256xf32> to vector<256xf32>
    %174 = vector.shape_cast %173 : vector<256xf32> to vector<1x256xf32>
    %175 = arith.mulf %172, %172 : vector<16x256xf32>
    %cst_35 = arith.constant dense<0.000000e+00> : vector<256xf32>
    %176 = vector.multi_reduction <add>, %175, %cst_35 [0] : vector<16x256xf32> to vector<256xf32>
    %177 = vector.shape_cast %176 : vector<256xf32> to vector<1x256xf32>
    %178 = vector.extract_strided_slice %174 {offsets = [0, 0], sizes = [1, 32], strides = [1, 1]} : vector<1x256xf32> to vector<1x32xf32>
    %179 = vector.extract_strided_slice %177 {offsets = [0, 0], sizes = [1, 32], strides = [1, 1]} : vector<1x256xf32> to vector<1x32xf32>
    %180 = vector.extract_strided_slice %174 {offsets = [0, 32], sizes = [1, 32], strides = [1, 1]} : vector<1x256xf32> to vector<1x32xf32>
    %181 = arith.addf %178, %180 : vector<1x32xf32>
    %182 = vector.extract_strided_slice %177 {offsets = [0, 32], sizes = [1, 32], strides = [1, 1]} : vector<1x256xf32> to vector<1x32xf32>
    %183 = arith.addf %179, %182 : vector<1x32xf32>
    %184 = vector.extract_strided_slice %174 {offsets = [0, 64], sizes = [1, 32], strides = [1, 1]} : vector<1x256xf32> to vector<1x32xf32>
    %185 = arith.addf %181, %184 : vector<1x32xf32>
    %186 = vector.extract_strided_slice %177 {offsets = [0, 64], sizes = [1, 32], strides = [1, 1]} : vector<1x256xf32> to vector<1x32xf32>
    %187 = arith.addf %183, %186 : vector<1x32xf32>
    %188 = vector.extract_strided_slice %174 {offsets = [0, 96], sizes = [1, 32], strides = [1, 1]} : vector<1x256xf32> to vector<1x32xf32>
    %189 = arith.addf %185, %188 : vector<1x32xf32>
    %190 = vector.extract_strided_slice %177 {offsets = [0, 96], sizes = [1, 32], strides = [1, 1]} : vector<1x256xf32> to vector<1x32xf32>
    %191 = arith.addf %187, %190 : vector<1x32xf32>
    %192 = vector.extract_strided_slice %174 {offsets = [0, 128], sizes = [1, 32], strides = [1, 1]} : vector<1x256xf32> to vector<1x32xf32>
    %193 = arith.addf %189, %192 : vector<1x32xf32>
    %194 = vector.extract_strided_slice %177 {offsets = [0, 128], sizes = [1, 32], strides = [1, 1]} : vector<1x256xf32> to vector<1x32xf32>
    %195 = arith.addf %191, %194 : vector<1x32xf32>
    %196 = vector.extract_strided_slice %174 {offsets = [0, 160], sizes = [1, 32], strides = [1, 1]} : vector<1x256xf32> to vector<1x32xf32>
    %197 = arith.addf %193, %196 : vector<1x32xf32>
    %198 = vector.extract_strided_slice %177 {offsets = [0, 160], sizes = [1, 32], strides = [1, 1]} : vector<1x256xf32> to vector<1x32xf32>
    %199 = arith.addf %195, %198 : vector<1x32xf32>
    %200 = vector.extract_strided_slice %174 {offsets = [0, 192], sizes = [1, 32], strides = [1, 1]} : vector<1x256xf32> to vector<1x32xf32>
    %201 = arith.addf %197, %200 : vector<1x32xf32>
    %202 = vector.extract_strided_slice %177 {offsets = [0, 192], sizes = [1, 32], strides = [1, 1]} : vector<1x256xf32> to vector<1x32xf32>
    %203 = arith.addf %199, %202 : vector<1x32xf32>
    %204 = vector.extract_strided_slice %174 {offsets = [0, 224], sizes = [1, 32], strides = [1, 1]} : vector<1x256xf32> to vector<1x32xf32>
    %205 = arith.addf %201, %204 : vector<1x32xf32>
    %206 = vector.extract_strided_slice %177 {offsets = [0, 224], sizes = [1, 32], strides = [1, 1]} : vector<1x256xf32> to vector<1x32xf32>
    %207 = arith.addf %203, %206 : vector<1x32xf32>
    %cst_36 = arith.constant 7.812500e-03 : f32
    %208 = vector.broadcast %cst_36 : f32 to vector<1x32xf32>
    %209 = arith.mulf %205, %208 : vector<1x32xf32>
    %cst_37 = arith.constant 7.812500e-03 : f32
    %210 = vector.broadcast %cst_37 : f32 to vector<1x32xf32>
    %211 = arith.mulf %207, %210 : vector<1x32xf32>
    %212 = arith.mulf %209, %209 : vector<1x32xf32>
    %213 = arith.subf %211, %212 : vector<1x32xf32>
    %c2_38 = arith.constant 2 : index
    %c0_39 = arith.constant 0 : index
    %214 = vector.load %arg6[%c2_38, %c0_39] : memref<8x32xf32, #tpu.memory_space<vmem>>, vector<1x32xf32>
    %c3 = arith.constant 3 : index
    %c0_40 = arith.constant 0 : index
    %215 = vector.load %arg6[%c3, %c0_40] : memref<8x32xf32, #tpu.memory_space<vmem>>, vector<1x32xf32>
    %cst_41 = arith.constant 9.99999974E-6 : f32
    %216 = vector.broadcast %cst_41 : f32 to vector<1x32xf32>
    %217 = arith.addf %213, %216 : vector<1x32xf32>
    %218 = math.rsqrt %217 : vector<1x32xf32>
    %219 = arith.mulf %214, %218 : vector<1x32xf32>
    %220 = arith.mulf %209, %219 : vector<1x32xf32>
    %221 = arith.subf %215, %220 : vector<1x32xf32>
    %222 = tpu.concatenate %219, %219, %219, %219, %219, %219, %219, %219 in 1 : vector<1x32xf32>, vector<1x32xf32>, vector<1x32xf32>, vector<1x32xf32>, vector<1x32xf32>, vector<1x32xf32>, vector<1x32xf32>, vector<1x32xf32> -> vector<1x256xf32>
    %223 = tpu.concatenate %221, %221, %221, %221, %221, %221, %221, %221 in 1 : vector<1x32xf32>, vector<1x32xf32>, vector<1x32xf32>, vector<1x32xf32>, vector<1x32xf32>, vector<1x32xf32>, vector<1x32xf32>, vector<1x32xf32> -> vector<1x256xf32>
    %224 = vector.broadcast %222 : vector<1x256xf32> to vector<16x256xf32>
    %225 = arith.mulf %172, %224 : vector<16x256xf32>
    %226 = vector.broadcast %223 : vector<1x256xf32> to vector<16x256xf32>
    %227 = arith.addf %225, %226 : vector<16x256xf32>
    %cst_42 = arith.constant 0.000000e+00 : f32
    %228 = vector.broadcast %cst_42 : f32 to vector<16x256xf32>
    %229 = arith.maximumf %227, %228 : vector<16x256xf32>
    %230 = vector.extract_strided_slice %229 {offsets = [0, 0], sizes = [2, 256], strides = [1, 1]} : vector<16x256xf32> to vector<2x256xf32>
    %231 = vector.extract_strided_slice %229 {offsets = [2, 0], sizes = [2, 256], strides = [1, 1]} : vector<16x256xf32> to vector<2x256xf32>
    %232 = arith.maximumf %230, %231 : vector<2x256xf32>
    %233 = vector.extract_strided_slice %229 {offsets = [4, 0], sizes = [2, 256], strides = [1, 1]} : vector<16x256xf32> to vector<2x256xf32>
    %234 = vector.extract_strided_slice %229 {offsets = [6, 0], sizes = [2, 256], strides = [1, 1]} : vector<16x256xf32> to vector<2x256xf32>
    %235 = arith.maximumf %233, %234 : vector<2x256xf32>
    %236 = vector.extract_strided_slice %229 {offsets = [8, 0], sizes = [2, 256], strides = [1, 1]} : vector<16x256xf32> to vector<2x256xf32>
    %237 = vector.extract_strided_slice %229 {offsets = [10, 0], sizes = [2, 256], strides = [1, 1]} : vector<16x256xf32> to vector<2x256xf32>
    %238 = arith.maximumf %236, %237 : vector<2x256xf32>
    %239 = vector.extract_strided_slice %229 {offsets = [12, 0], sizes = [2, 256], strides = [1, 1]} : vector<16x256xf32> to vector<2x256xf32>
    %240 = vector.extract_strided_slice %229 {offsets = [14, 0], sizes = [2, 256], strides = [1, 1]} : vector<16x256xf32> to vector<2x256xf32>
    %241 = arith.maximumf %239, %240 : vector<2x256xf32>
    %242 = tpu.concatenate %232, %235, %238, %241 in 0 : vector<2x256xf32>, vector<2x256xf32>, vector<2x256xf32>, vector<2x256xf32> -> vector<8x256xf32>
    %243 = vector.extract_strided_slice %242 {offsets = [0, 0], sizes = [8, 32], strides = [1, 1]} : vector<8x256xf32> to vector<8x32xf32>
    %244 = vector.extract_strided_slice %242 {offsets = [0, 32], sizes = [8, 32], strides = [1, 1]} : vector<8x256xf32> to vector<8x32xf32>
    %245 = arith.maximumf %243, %244 : vector<8x32xf32>
    %246 = vector.extract_strided_slice %242 {offsets = [0, 64], sizes = [8, 32], strides = [1, 1]} : vector<8x256xf32> to vector<8x32xf32>
    %247 = vector.extract_strided_slice %242 {offsets = [0, 96], sizes = [8, 32], strides = [1, 1]} : vector<8x256xf32> to vector<8x32xf32>
    %248 = arith.maximumf %246, %247 : vector<8x32xf32>
    %249 = vector.extract_strided_slice %242 {offsets = [0, 128], sizes = [8, 32], strides = [1, 1]} : vector<8x256xf32> to vector<8x32xf32>
    %250 = vector.extract_strided_slice %242 {offsets = [0, 160], sizes = [8, 32], strides = [1, 1]} : vector<8x256xf32> to vector<8x32xf32>
    %251 = arith.maximumf %249, %250 : vector<8x32xf32>
    %252 = vector.extract_strided_slice %242 {offsets = [0, 192], sizes = [8, 32], strides = [1, 1]} : vector<8x256xf32> to vector<8x32xf32>
    %253 = vector.extract_strided_slice %242 {offsets = [0, 224], sizes = [8, 32], strides = [1, 1]} : vector<8x256xf32> to vector<8x32xf32>
    %254 = arith.maximumf %252, %253 : vector<8x32xf32>
    %255 = tpu.concatenate %245, %248, %251, %254 in 1 : vector<8x32xf32>, vector<8x32xf32>, vector<8x32xf32>, vector<8x32xf32> -> vector<8x128xf32>
    %256 = arith.truncf %255 : vector<8x128xf32> to vector<8x128xbf16>
    %cst_43 = arith.constant 0.000000e+00 : bf16
    %257 = vector.broadcast %cst_43 : bf16 to vector<2x128xbf16>
    %258 = vector.extract_strided_slice %256 {offsets = [0, 0], sizes = [6, 128], strides = [1, 1]} : vector<8x128xbf16> to vector<6x128xbf16>
    %259 = tpu.concatenate %257, %258 in 0 : vector<2x128xbf16>, vector<6x128xbf16> -> vector<8x128xbf16>
    %260 = vector.extract_strided_slice %256 {offsets = [2, 0], sizes = [6, 128], strides = [1, 1]} : vector<8x128xbf16> to vector<6x128xbf16>
    %261 = tpu.concatenate %260, %257 in 0 : vector<6x128xbf16>, vector<2x128xbf16> -> vector<8x128xbf16>
    %c0_44 = arith.constant 0 : index
    %c0_45 = arith.constant 0 : index
    %c0_46 = arith.constant 0 : index
    %262 = vector.load %arg4[%c0_44, %c0_45, %c0_46] : memref<3x128x128xbf16, #tpu.memory_space<vmem>>, vector<1x128x128xbf16>
    %263 = vector.shape_cast %262 : vector<1x128x128xbf16> to vector<128x128xbf16>
    %cst_47 = arith.constant dense<0.000000e+00> : vector<8x128xf32>
    %264 = tpu.matmul %259, %263, %cst_47 {dimension_numbers = #tpu.dot_dimension_numbers<[1], [0], [0], [1], [0, 0, 1, 1], [], []>} : vector<8x128xbf16>, vector<128x128xbf16>, vector<8x128xf32> -> vector<8x128xf32>
    %c1_48 = arith.constant 1 : index
    %c0_49 = arith.constant 0 : index
    %c0_50 = arith.constant 0 : index
    %265 = vector.load %arg4[%c1_48, %c0_49, %c0_50] : memref<3x128x128xbf16, #tpu.memory_space<vmem>>, vector<1x128x128xbf16>
    %266 = vector.shape_cast %265 : vector<1x128x128xbf16> to vector<128x128xbf16>
    %cst_51 = arith.constant dense<0.000000e+00> : vector<8x128xf32>
    %267 = tpu.matmul %256, %266, %cst_51 {dimension_numbers = #tpu.dot_dimension_numbers<[1], [0], [0], [1], [0, 0, 1, 1], [], []>} : vector<8x128xbf16>, vector<128x128xbf16>, vector<8x128xf32> -> vector<8x128xf32>
    %268 = arith.addf %264, %267 : vector<8x128xf32>
    %c2_52 = arith.constant 2 : index
    %c0_53 = arith.constant 0 : index
    %c0_54 = arith.constant 0 : index
    %269 = vector.load %arg4[%c2_52, %c0_53, %c0_54] : memref<3x128x128xbf16, #tpu.memory_space<vmem>>, vector<1x128x128xbf16>
    %270 = vector.shape_cast %269 : vector<1x128x128xbf16> to vector<128x128xbf16>
    %cst_55 = arith.constant dense<0.000000e+00> : vector<8x128xf32>
    %271 = tpu.matmul %261, %270, %cst_55 {dimension_numbers = #tpu.dot_dimension_numbers<[1], [0], [0], [1], [0, 0, 1, 1], [], []>} : vector<8x128xbf16>, vector<128x128xbf16>, vector<8x128xf32> -> vector<8x128xf32>
    %272 = arith.addf %268, %271 : vector<8x128xf32>
    %cst_56 = arith.constant dense<0.000000e+00> : vector<128xf32>
    %273 = vector.multi_reduction <add>, %272, %cst_56 [0] : vector<8x128xf32> to vector<128xf32>
    %274 = vector.shape_cast %273 : vector<128xf32> to vector<1x128xf32>
    %275 = arith.mulf %272, %272 : vector<8x128xf32>
    %cst_57 = arith.constant dense<0.000000e+00> : vector<128xf32>
    %276 = vector.multi_reduction <add>, %275, %cst_57 [0] : vector<8x128xf32> to vector<128xf32>
    %277 = vector.shape_cast %276 : vector<128xf32> to vector<1x128xf32>
    %278 = vector.extract_strided_slice %274 {offsets = [0, 0], sizes = [1, 32], strides = [1, 1]} : vector<1x128xf32> to vector<1x32xf32>
    %279 = vector.extract_strided_slice %277 {offsets = [0, 0], sizes = [1, 32], strides = [1, 1]} : vector<1x128xf32> to vector<1x32xf32>
    %280 = vector.extract_strided_slice %274 {offsets = [0, 32], sizes = [1, 32], strides = [1, 1]} : vector<1x128xf32> to vector<1x32xf32>
    %281 = arith.addf %278, %280 : vector<1x32xf32>
    %282 = vector.extract_strided_slice %277 {offsets = [0, 32], sizes = [1, 32], strides = [1, 1]} : vector<1x128xf32> to vector<1x32xf32>
    %283 = arith.addf %279, %282 : vector<1x32xf32>
    %284 = vector.extract_strided_slice %274 {offsets = [0, 64], sizes = [1, 32], strides = [1, 1]} : vector<1x128xf32> to vector<1x32xf32>
    %285 = arith.addf %281, %284 : vector<1x32xf32>
    %286 = vector.extract_strided_slice %277 {offsets = [0, 64], sizes = [1, 32], strides = [1, 1]} : vector<1x128xf32> to vector<1x32xf32>
    %287 = arith.addf %283, %286 : vector<1x32xf32>
    %288 = vector.extract_strided_slice %274 {offsets = [0, 96], sizes = [1, 32], strides = [1, 1]} : vector<1x128xf32> to vector<1x32xf32>
    %289 = arith.addf %285, %288 : vector<1x32xf32>
    %290 = vector.extract_strided_slice %277 {offsets = [0, 96], sizes = [1, 32], strides = [1, 1]} : vector<1x128xf32> to vector<1x32xf32>
    %291 = arith.addf %287, %290 : vector<1x32xf32>
    %cst_58 = arith.constant 3.125000e-02 : f32
    %292 = vector.broadcast %cst_58 : f32 to vector<1x32xf32>
    %293 = arith.mulf %289, %292 : vector<1x32xf32>
    %cst_59 = arith.constant 3.125000e-02 : f32
    %294 = vector.broadcast %cst_59 : f32 to vector<1x32xf32>
    %295 = arith.mulf %291, %294 : vector<1x32xf32>
    %296 = arith.mulf %293, %293 : vector<1x32xf32>
    %297 = arith.subf %295, %296 : vector<1x32xf32>
    %c4 = arith.constant 4 : index
    %c0_60 = arith.constant 0 : index
    %298 = vector.load %arg6[%c4, %c0_60] : memref<8x32xf32, #tpu.memory_space<vmem>>, vector<1x32xf32>
    %c5 = arith.constant 5 : index
    %c0_61 = arith.constant 0 : index
    %299 = vector.load %arg6[%c5, %c0_61] : memref<8x32xf32, #tpu.memory_space<vmem>>, vector<1x32xf32>
    %cst_62 = arith.constant 9.99999974E-6 : f32
    %300 = vector.broadcast %cst_62 : f32 to vector<1x32xf32>
    %301 = arith.addf %297, %300 : vector<1x32xf32>
    %302 = math.rsqrt %301 : vector<1x32xf32>
    %303 = arith.mulf %298, %302 : vector<1x32xf32>
    %304 = arith.mulf %293, %303 : vector<1x32xf32>
    %305 = arith.subf %299, %304 : vector<1x32xf32>
    %306 = tpu.concatenate %303, %303, %303, %303 in 1 : vector<1x32xf32>, vector<1x32xf32>, vector<1x32xf32>, vector<1x32xf32> -> vector<1x128xf32>
    %307 = tpu.concatenate %305, %305, %305, %305 in 1 : vector<1x32xf32>, vector<1x32xf32>, vector<1x32xf32>, vector<1x32xf32> -> vector<1x128xf32>
    %308 = vector.broadcast %306 : vector<1x128xf32> to vector<8x128xf32>
    %309 = arith.mulf %272, %308 : vector<8x128xf32>
    %310 = vector.broadcast %307 : vector<1x128xf32> to vector<8x128xf32>
    %311 = arith.addf %309, %310 : vector<8x128xf32>
    %cst_63 = arith.constant 0.000000e+00 : f32
    %312 = vector.broadcast %cst_63 : f32 to vector<8x128xf32>
    %313 = arith.maximumf %311, %312 : vector<8x128xf32>
    %314 = vector.extract_strided_slice %313 {offsets = [0, 0], sizes = [2, 128], strides = [1, 1]} : vector<8x128xf32> to vector<2x128xf32>
    %315 = vector.extract_strided_slice %313 {offsets = [2, 0], sizes = [2, 128], strides = [1, 1]} : vector<8x128xf32> to vector<2x128xf32>
    %316 = arith.maximumf %314, %315 : vector<2x128xf32>
    %317 = vector.extract_strided_slice %313 {offsets = [4, 0], sizes = [2, 128], strides = [1, 1]} : vector<8x128xf32> to vector<2x128xf32>
    %318 = vector.extract_strided_slice %313 {offsets = [6, 0], sizes = [2, 128], strides = [1, 1]} : vector<8x128xf32> to vector<2x128xf32>
    %319 = arith.maximumf %317, %318 : vector<2x128xf32>
    %320 = tpu.concatenate %316, %319 in 0 : vector<2x128xf32>, vector<2x128xf32> -> vector<4x128xf32>
    %321 = vector.extract_strided_slice %320 {offsets = [0, 0], sizes = [4, 32], strides = [1, 1]} : vector<4x128xf32> to vector<4x32xf32>
    %322 = vector.extract_strided_slice %320 {offsets = [0, 32], sizes = [4, 32], strides = [1, 1]} : vector<4x128xf32> to vector<4x32xf32>
    %323 = arith.maximumf %321, %322 : vector<4x32xf32>
    %324 = vector.extract_strided_slice %320 {offsets = [0, 64], sizes = [4, 32], strides = [1, 1]} : vector<4x128xf32> to vector<4x32xf32>
    %325 = vector.extract_strided_slice %320 {offsets = [0, 96], sizes = [4, 32], strides = [1, 1]} : vector<4x128xf32> to vector<4x32xf32>
    %326 = arith.maximumf %324, %325 : vector<4x32xf32>
    %327 = tpu.concatenate %323, %326 in 1 : vector<4x32xf32>, vector<4x32xf32> -> vector<4x64xf32>
    %328 = arith.truncf %327 : vector<4x64xf32> to vector<4x64xbf16>
    %cst_64 = arith.constant 0.000000e+00 : bf16
    %329 = vector.broadcast %cst_64 : bf16 to vector<2x64xbf16>
    %330 = vector.extract_strided_slice %328 {offsets = [0, 0], sizes = [2, 64], strides = [1, 1]} : vector<4x64xbf16> to vector<2x64xbf16>
    %331 = tpu.concatenate %329, %330 in 0 : vector<2x64xbf16>, vector<2x64xbf16> -> vector<4x64xbf16>
    %332 = vector.extract_strided_slice %328 {offsets = [2, 0], sizes = [2, 64], strides = [1, 1]} : vector<4x64xbf16> to vector<2x64xbf16>
    %333 = tpu.concatenate %332, %329 in 0 : vector<2x64xbf16>, vector<2x64xbf16> -> vector<4x64xbf16>
    %c0_65 = arith.constant 0 : index
    %c0_66 = arith.constant 0 : index
    %c0_67 = arith.constant 0 : index
    %334 = vector.load %arg5[%c0_65, %c0_66, %c0_67] : memref<3x64x64xbf16, #tpu.memory_space<vmem>>, vector<1x64x64xbf16>
    %335 = vector.shape_cast %334 : vector<1x64x64xbf16> to vector<64x64xbf16>
    %cst_68 = arith.constant dense<0.000000e+00> : vector<4x64xf32>
    %336 = tpu.matmul %331, %335, %cst_68 {dimension_numbers = #tpu.dot_dimension_numbers<[1], [0], [0], [1], [0, 0, 1, 1], [], []>} : vector<4x64xbf16>, vector<64x64xbf16>, vector<4x64xf32> -> vector<4x64xf32>
    %c1_69 = arith.constant 1 : index
    %c0_70 = arith.constant 0 : index
    %c0_71 = arith.constant 0 : index
    %337 = vector.load %arg5[%c1_69, %c0_70, %c0_71] : memref<3x64x64xbf16, #tpu.memory_space<vmem>>, vector<1x64x64xbf16>
    %338 = vector.shape_cast %337 : vector<1x64x64xbf16> to vector<64x64xbf16>
    %cst_72 = arith.constant dense<0.000000e+00> : vector<4x64xf32>
    %339 = tpu.matmul %328, %338, %cst_72 {dimension_numbers = #tpu.dot_dimension_numbers<[1], [0], [0], [1], [0, 0, 1, 1], [], []>} : vector<4x64xbf16>, vector<64x64xbf16>, vector<4x64xf32> -> vector<4x64xf32>
    %340 = arith.addf %336, %339 : vector<4x64xf32>
    %c2_73 = arith.constant 2 : index
    %c0_74 = arith.constant 0 : index
    %c0_75 = arith.constant 0 : index
    %341 = vector.load %arg5[%c2_73, %c0_74, %c0_75] : memref<3x64x64xbf16, #tpu.memory_space<vmem>>, vector<1x64x64xbf16>
    %342 = vector.shape_cast %341 : vector<1x64x64xbf16> to vector<64x64xbf16>
    %cst_76 = arith.constant dense<0.000000e+00> : vector<4x64xf32>
    %343 = tpu.matmul %333, %342, %cst_76 {dimension_numbers = #tpu.dot_dimension_numbers<[1], [0], [0], [1], [0, 0, 1, 1], [], []>} : vector<4x64xbf16>, vector<64x64xbf16>, vector<4x64xf32> -> vector<4x64xf32>
    %344 = arith.addf %340, %343 : vector<4x64xf32>
    %cst_77 = arith.constant dense<0.000000e+00> : vector<64xf32>
    %345 = vector.multi_reduction <add>, %344, %cst_77 [0] : vector<4x64xf32> to vector<64xf32>
    %346 = vector.shape_cast %345 : vector<64xf32> to vector<1x64xf32>
    %347 = arith.mulf %344, %344 : vector<4x64xf32>
    %cst_78 = arith.constant dense<0.000000e+00> : vector<64xf32>
    %348 = vector.multi_reduction <add>, %347, %cst_78 [0] : vector<4x64xf32> to vector<64xf32>
    %349 = vector.shape_cast %348 : vector<64xf32> to vector<1x64xf32>
    %350 = vector.extract_strided_slice %346 {offsets = [0, 0], sizes = [1, 32], strides = [1, 1]} : vector<1x64xf32> to vector<1x32xf32>
    %351 = vector.extract_strided_slice %349 {offsets = [0, 0], sizes = [1, 32], strides = [1, 1]} : vector<1x64xf32> to vector<1x32xf32>
    %352 = vector.extract_strided_slice %346 {offsets = [0, 32], sizes = [1, 32], strides = [1, 1]} : vector<1x64xf32> to vector<1x32xf32>
    %353 = arith.addf %350, %352 : vector<1x32xf32>
    %354 = vector.extract_strided_slice %349 {offsets = [0, 32], sizes = [1, 32], strides = [1, 1]} : vector<1x64xf32> to vector<1x32xf32>
    %355 = arith.addf %351, %354 : vector<1x32xf32>
    %cst_79 = arith.constant 1.250000e-01 : f32
    %356 = vector.broadcast %cst_79 : f32 to vector<1x32xf32>
    %357 = arith.mulf %353, %356 : vector<1x32xf32>
    %cst_80 = arith.constant 1.250000e-01 : f32
    %358 = vector.broadcast %cst_80 : f32 to vector<1x32xf32>
    %359 = arith.mulf %355, %358 : vector<1x32xf32>
    %360 = arith.mulf %357, %357 : vector<1x32xf32>
    %361 = arith.subf %359, %360 : vector<1x32xf32>
    %c6 = arith.constant 6 : index
    %c0_81 = arith.constant 0 : index
    %362 = vector.load %arg6[%c6, %c0_81] : memref<8x32xf32, #tpu.memory_space<vmem>>, vector<1x32xf32>
    %c7 = arith.constant 7 : index
    %c0_82 = arith.constant 0 : index
    %363 = vector.load %arg6[%c7, %c0_82] : memref<8x32xf32, #tpu.memory_space<vmem>>, vector<1x32xf32>
    %cst_83 = arith.constant 9.99999974E-6 : f32
    %364 = vector.broadcast %cst_83 : f32 to vector<1x32xf32>
    %365 = arith.addf %361, %364 : vector<1x32xf32>
    %366 = math.rsqrt %365 : vector<1x32xf32>
    %367 = arith.mulf %362, %366 : vector<1x32xf32>
    %368 = arith.mulf %357, %367 : vector<1x32xf32>
    %369 = arith.subf %363, %368 : vector<1x32xf32>
    %370 = tpu.concatenate %367, %367 in 1 : vector<1x32xf32>, vector<1x32xf32> -> vector<1x64xf32>
    %371 = tpu.concatenate %369, %369 in 1 : vector<1x32xf32>, vector<1x32xf32> -> vector<1x64xf32>
    %372 = vector.broadcast %370 : vector<1x64xf32> to vector<4x64xf32>
    %373 = arith.mulf %344, %372 : vector<4x64xf32>
    %374 = vector.broadcast %371 : vector<1x64xf32> to vector<4x64xf32>
    %375 = arith.addf %373, %374 : vector<4x64xf32>
    %cst_84 = arith.constant 0.000000e+00 : f32
    %376 = vector.broadcast %cst_84 : f32 to vector<4x64xf32>
    %377 = arith.maximumf %375, %376 : vector<4x64xf32>
    %378 = vector.extract_strided_slice %377 {offsets = [0, 0], sizes = [2, 64], strides = [1, 1]} : vector<4x64xf32> to vector<2x64xf32>
    %379 = vector.extract_strided_slice %377 {offsets = [2, 0], sizes = [2, 64], strides = [1, 1]} : vector<4x64xf32> to vector<2x64xf32>
    %380 = arith.maximumf %378, %379 : vector<2x64xf32>
    %381 = vector.extract_strided_slice %380 {offsets = [0, 0], sizes = [2, 32], strides = [1, 1]} : vector<2x64xf32> to vector<2x32xf32>
    %382 = vector.extract_strided_slice %380 {offsets = [0, 32], sizes = [2, 32], strides = [1, 1]} : vector<2x64xf32> to vector<2x32xf32>
    %383 = arith.maximumf %381, %382 : vector<2x32xf32>
    %c0_85 = arith.constant 0 : index
    %c0_86 = arith.constant 0 : index
    %384 = vector.load %arg7[%c0_85, %c0_86] : memref<2x32xf32, #tpu.memory_space<vmem>>, vector<2x32xf32>
    tpu.vector_store %arg7[%c0_85, %c0_86], %383 {strides = array<i32>} : memref<2x32xf32, #tpu.memory_space<vmem>>, vector<2x32xf32>,
    return
  }
  func.func @transform_0(%arg0: i32) -> (i32, i32) {
    %c0_i32 = arith.constant 0 : i32
    %c0_i32_0 = arith.constant 0 : i32
    %c0_i32_1 = arith.constant 0 : i32
    return %c0_i32, %c0_i32_0 : i32, i32
  }
  func.func @transform_1(%arg0: i32) -> (i32, i32, i32) {
    %c0_i32 = arith.constant 0 : i32
    %c0_i32_0 = arith.constant 0 : i32
    %c0_i32_1 = arith.constant 0 : i32
    %c0_i32_2 = arith.constant 0 : i32
    return %c0_i32, %c0_i32_0, %c0_i32_1 : i32, i32, i32
  }
  func.func @transform_2(%arg0: i32) -> (i32, i32, i32) {
    %c0_i32 = arith.constant 0 : i32
    %c0_i32_0 = arith.constant 0 : i32
    %c0_i32_1 = arith.constant 0 : i32
    %c0_i32_2 = arith.constant 0 : i32
    return %c0_i32, %c0_i32_0, %c0_i32_1 : i32, i32, i32
  }
  func.func @transform_3(%arg0: i32) -> (i32, i32, i32) {
    %c0_i32 = arith.constant 0 : i32
    %c0_i32_0 = arith.constant 0 : i32
    %c0_i32_1 = arith.constant 0 : i32
    %c0_i32_2 = arith.constant 0 : i32
    return %c0_i32, %c0_i32_0, %c0_i32_1 : i32, i32, i32
  }
  func.func @transform_4(%arg0: i32) -> (i32, i32, i32) {
    %c0_i32 = arith.constant 0 : i32
    %c0_i32_0 = arith.constant 0 : i32
    %c0_i32_1 = arith.constant 0 : i32
    %c0_i32_2 = arith.constant 0 : i32
    return %c0_i32, %c0_i32_0, %c0_i32_1 : i32, i32, i32
  }
  func.func @transform_5(%arg0: i32) -> (i32, i32) {
    %c0_i32 = arith.constant 0 : i32
    %c0_i32_0 = arith.constant 0 : i32
    %c0_i32_1 = arith.constant 0 : i32
    return %c0_i32, %c0_i32_0 : i32, i32
  }
  func.func @transform_6(%arg0: i32) -> (i32, i32) {
    %c0_i32 = arith.constant 0 : i32
    %c0_i32_0 = arith.constant 0 : i32
    %c0_i32_1 = arith.constant 0 : i32
    return %c0_i32, %c0_i32_0 : i32, i32
  }
}

</mosaic_0001>

<bundles_post_ra>
// kernel: omniglot_net_forward.1
= control target key start
LH: loop header
LB: loop body
LE: loop exit
PB: predicated region body
PF: predicated region fallthrough
CT: control target
= control target key end

     0   :  { %v3488_v2 = vmov 0   ;;  %vm83_vm0 = vcmask 130048   ;;  %vm39_vm1 = vcmask 1040384   ;;  %vm47_vm2 = vcmask 1046528   ;;  %s4479_s0 = inlined_call_operand.vmem [shape: bf16[32,16], index: 0, kind: input, shape index: {}]   ;;  %s4480_s1 = inlined_call_operand.vmem [shape: bf16[3,16,512], index: 1, kind: input, shape index: {}]   ;;  %s4481_s2 = inlined_call_operand.vmem [shape: bf16[3,256,256], index: 2, kind: input, shape index: {}]   ;;  %s4482_s3 = inlined_call_operand.vmem [shape: bf16[3,128,128], index: 3, kind: input, shape index: {}]   ;;  %s4483_s4 = inlined_call_operand.vmem [shape: bf16[3,64,64], index: 4, kind: input, shape index: {}]   ;;  %s4484_s5 = inlined_call_operand.vmem [shape: f32[8,32], index: 5, kind: input, shape index: {}]   ;;  %s4485_s6 = inlined_call_operand.hbm [shape: f32[2,32], index: 6, kind: output, shape index: {}]  }
   0x1   :  { %v3256_v0 = vld [vmem:[%s4480_s1 + $0x24] ss:$16 sps:$4 sm:$0xff]   ;;  %122 = vmatprep.mubr.bf16.mxu1 %v3488_v2  ;;  %253 = vmatprep.mubr.bf16.mxu0 %v3488_v2  ;;  %v3260_v3 = vld [vmem:[%s4480_s1 + $0x20] ss:$16 sps:$4 sm:$0xff]   ;;  %v3263_v6 = vld [vmem:[%s4480_s1 + $0x28] ss:$16 sps:$4 sm:$0xff]  }
   0x2   :  { %v3258_v1 = vld [vmem:[%s4480_s1 + $0x4] ss:$16 sps:$4 sm:$0xff]   ;;  %90 = vmatprep.subr.bf16.mxu1 %v3256_v0  ;;  %v3261_v4 = vld [vmem:[%s4480_s1] ss:$16 sps:$4 sm:$0xff]   ;;  %v3265_v7 = vld [vmem:[%s4480_s1 + $0x2c] ss:$16 sps:$4 sm:$0xff]  }
   0x3   :  { %221 = vmatprep.subr.bf16.mxu0 %v3258_v1  ;;  %v3262_v5 = vld [vmem:[%s4479_s0] sm:$0xff]   ;;  %91 = vmatpush1.bf16.msra.mxu1 %v3260_v3  ;;  %v3266_v12 = vld [vmem:[%s4479_s0 + $0x8] sm:$0xff]  }
   0x4   :  { %222 = vmatpush1.bf16.msra.mxu0 %v3261_v4  ;;  %v40_v8 = vrot.slane %v3262_v5, 7  ;;  %143 = vmatprep.subr.bf16.mxu1 %v3265_v7  ;;  %v3267_v9 = vld [vmem:[%s4480_s1 + $0x40] ss:$16 sps:$4 sm:$0xff]   ;;  %v3269_v11 = vld [vmem:[%s4480_s1 + $0x44] ss:$16 sps:$4 sm:$0xff]   ;;  %v48_v13 = vrot.slane %v3262_v5, 1 }
   0x5   :  { %357 = vmatprep.subr.bf16.mxu0 %v3269_v11  ;;  %v49_v14 = vrot.slane %v3266_v12, 1  ;;  %v3272_v16 = vld [vmem:[%s4480_s1 + $0xc] ss:$16 sps:$4 sm:$0xff]   ;;  %v41_v18 = vrot.slane %v3266_v12, 7  ;;  %v3270_v19 = vld [vmem:[%s4480_s1 + $0x8] ss:$16 sps:$4 sm:$0xff]  }
   0x6   :  { %2718 = vmatmul.mubr.msk.bf16.vlgmr.msra.gmra.mrb[0].mxu1 %vm83_vm0, %v3262_v5  ;;  %v46_v10 = vsel %vm39_vm1, 0, %v40_v8  ;;  %v3275_v20 = vld [vmem:[%s4480_s1 + $0x4c] ss:$16 sps:$4 sm:$0xff]   ;;  %v3273_v22 = vld [vmem:[%s4480_s1 + $0x48] ss:$16 sps:$4 sm:$0xff]  }
   0x7   :  { %2726 = vmatmul.mubr.msk.bf16.vlgmr.msra.gmra.mrb[0].mxu0 %vm83_vm0, %v46_v10  ;;  %144 = vmatpush1.bf16.msra.mxu1 %v3263_v6  ;;  %v50_v15 = vsel %vm47_vm2, %v48_v13, %v49_v14  ;;  %v53_v17 = vsel %vm47_vm2, %v49_v14, 0  ;;  %v42_v21 = vsel %vm39_vm1, %v40_v8, %v41_v18 }
   0x8   :  { %132 = vmatprep.mubr.bf16.mxu1 %v3488_v2  ;;  %358 = vmatpush1.bf16.msra.mxu0 %v3267_v9 }
   0x9   :  { %389 = vmatprep.mubr.bf16.mxu0 %v3488_v2  ;;  %3136 = vmatprep.subr.bf16.mxu1 %v3258_v1 }
   0xe   :  { %2719 = vmatmul.mubr.msk.bf16.gmra.mrb[4].mxu1 %vm83_vm0, %v3266_v12 }
   0xf   :  { %175 = vmatprep.mubr.bf16.mxu1 %v3488_v2 }
  0x13   :  { %2738 = vmatmul.mubr.msk.bf16.vlgmr.msra.gmra.mrb[0].mxu0 %vm83_vm0, %v50_v15 }
  0x14   :  { %399 = vmatprep.mubr.bf16.mxu0 %v3488_v2 }
  0x16   :  { %2720 = vmatmul.mubr.msk.bf16.vlgmr.msra.gmra.mrb[8].mxu1 %vm83_vm0, %v3262_v5 }
  0x17   :  { %3137 = vmatpush1.bf16.msra.mxu1 %v3261_v4  ;;  %185 = vmatprep.mubr.bf16.mxu1 %v3488_v2 }
  0x18   :  { %274 = vmatprep.subr.bf16.mxu1 %v3272_v16 }
  0x1b   :  { %2739 = vmatmul.mubr.msk.bf16.gmra.mrb[4].mxu0 %vm83_vm0, %v53_v17 }
  0x1e   :  { %2721 = vmatmul.mubr.msk.bf16.gmra.mrb[12].mxu1 %vm83_vm0, %v3266_v12 }
  0x1f   :  { %263 = vmatprep.mubr.bf16.mxu1 %v3488_v2 }
  0x26   :  { %2727 = vmatmul.mubr.msk.bf16.vlgmr.msra.gmra.mrb[4].mxu1 %vm83_vm0, %v42_v21 }
  0x27   :  { %275 = vmatpush1.bf16.msra.mxu1 %v3270_v19  ;;  %306 = vmatprep.mubr.bf16.mxu1 %v3488_v2 }
  0x28   :  { %410 = vmatprep.subr.bf16.mxu1 %v3275_v20 }
  0x2e   :  { %2728 = vmatmul.mubr.msk.bf16.vlgmr.msra.gmra.mrb[8].mxu1 %vm83_vm0, %v46_v10 }
  0x2f   :  { %411 = vmatpush1.bf16.msra.mxu1 %v3273_v22  ;;  %316 = vmatprep.mubr.bf16.mxu1 %v3488_v2 }
  0x36   :  { %2729 = vmatmul.mubr.msk.bf16.gmra.mrb[12].mxu1 %vm83_vm0, %v42_v21 }
  0x37   :  { %442 = vmatprep.mubr.bf16.mxu1 %v3488_v2 }
  0x3e   :  { %2740 = vmatmul.mubr.msk.bf16.vlgmr.msra.gmra.mrb[8].mxu1 %vm83_vm0, %v50_v15 }
  0x3f   :  { %452 = vmatprep.mubr.bf16.mxu1 %v3488_v2 }
  0x40   :  { %11 = vsyncpa [#allocation3], 0  ;;  %s3489_s1 = smov 64   ;;  %s3490_s24 = smov 96   ;;  %vm698_vm3 = vcmask 261120   ;;  %vm700_vm4 = vcmask 523264  }
  0x41   :  { %s3491_s25 = smov 32   ;;  %vm702_vm5 = vcmask 785408   ;;  %vm901_vm6 = vcmask 1041408   ;;  %vm906_vm7 = vcmask 1043456   ;;  %vm911_vm8 = vcmask 1045504   ;;  %vm3983_vm9 = vmneg %vm39_vm1 }
  0x42   :  { %vm3493_vm10 = vmmov 0   ;;  %vm1967_vm11 = vcmask 1042432   ;;  %vm2625_vm12 = vcmask 519168   ;;  %vm2692_vm13 = vcmask 254976  }
  0x46   :  { %2741 = vmatmul.mubr.msk.bf16.gmra.mrb[12].mxu1 %vm83_vm0, %v53_v17 }
  0xd9   :  { %v124_v23 = vpop.f32.mrb[0].mxu1 }
  0xda   :  { %v126_v24 = vpop.f32.mrb[1].mxu1 }
  0xdb   :  { %v128_v25 = vpop.f32.mrb[2].mxu1 }
  0xdc   :  { %v130_v26 = vpop.f32.mrb[3].mxu1 }
  0xe6   :  { %v391_v27 = vpop.f32.mrb[0].mxu0 }
  0xe7   :  { %v3588_v28 = vadd.f32 %v391_v27, %v124_v23  ;;  %v393_v29 = vpop.f32.mrb[1].mxu0 }
  0xe8   :  { %v3590_v30 = vadd.f32 %v393_v29, %v126_v24  ;;  %v395_v31 = vpop.f32.mrb[2].mxu0 }
  0xe9   :  { %v3592_v32 = vadd.f32 %v395_v31, %v128_v25  ;;  %v397_v33 = vpop.f32.mrb[3].mxu0  ;;  %v515_v42 = vmul.f32 %v3588_v28, %v3588_v28 }
  0xea   :  { %v3594_v34 = vadd.f32 %v397_v33, %v130_v26  ;;  %v516_v46 = vmul.f32 %v3590_v30, %v3590_v30 }
  0xeb   :  { %v519_v39 = vmul.f32 %v3592_v32, %v3592_v32  ;;  %v479_v43 = vadd.f32 %v3592_v32, %v3588_v28 }
  0xec   :  { %v520_v40 = vmul.f32 %v3594_v34, %v3594_v34  ;;  %v488_v47 = vadd.f32 %v3594_v34, %v3590_v30 }
  0xed   :  { %v531_v50 = vadd.f32 %v519_v39, %v515_v42 }
  0xee   :  { %v401_v35 = vpop.f32.mrb[4].mxu0  ;;  %v540_v55 = vadd.f32 %v520_v40, %v516_v46 }
  0xef   :  { %v403_v36 = vpop.f32.mrb[5].mxu0 }
  0xf0   :  { %v405_v37 = vpop.f32.mrb[6].mxu0 }
  0xf1   :  { %v407_v38 = vpop.f32.mrb[7].mxu0 }
  0xf9   :  { %v265_v41 = vpop.f32.mrb[4].mxu1 }
  0xfa   :  { %v3604_v44 = vadd.f32 %v401_v35, %v265_v41  ;;  %v267_v45 = vpop.f32.mrb[5].mxu1 }
  0xfb   :  { %v3610_v48 = vadd.f32 %v403_v36, %v267_v45  ;;  %v269_v49 = vpop.f32.mrb[6].mxu1 }
  0xfc   :  { %v480_v51 = vadd.f32 %v3604_v44, %v479_v43  ;;  %v523_v52 = vmul.f32 %v3604_v44, %v3604_v44  ;;  %v3615_v53 = vadd.f32 %v405_v37, %v269_v49  ;;  %v271_v54 = vpop.f32.mrb[7].mxu1 }
  0xfd   :  { %v489_v56 = vadd.f32 %v3610_v48, %v488_v47  ;;  %v524_v57 = vmul.f32 %v3610_v48, %v3610_v48  ;;  %v3620_v58 = vadd.f32 %v407_v38, %v271_v54 }
  0xfe   :  { %v532_v59 = vadd.f32 %v531_v50, %v523_v52  ;;  %v481_v60 = vadd.f32 %v3615_v53, %v480_v51  ;;  %v527_v61 = vmul.f32 %v3615_v53, %v3615_v53 }
  0xff   :  { %v541_v62 = vadd.f32 %v540_v55, %v524_v57  ;;  %v490_v63 = vadd.f32 %v3620_v58, %v489_v56  ;;  %v528_v0 = vmul.f32 %v3620_v58, %v3620_v58 }
 0x100   :  { %v482_v1 = vrot.slane %v481_v60, 4  ;;  %v533_v2 = vadd.f32 %v532_v59, %v527_v61 }
 0x101   :  { %v491_v3 = vrot.slane %v490_v63, 4  ;;  %v542_v4 = vadd.f32 %v541_v62, %v528_v0 }
 0x102   :  { %v483_v5 = vadd.f32 %v482_v1, %v481_v60  ;;  %v534_v6 = vrot.slane %v533_v2, 4 }
 0x103   :  { %v492_v7 = vadd.f32 %v491_v3, %v490_v63  ;;  %v543_v8 = vrot.slane %v542_v4, 4 }
 0x104   :  { %v484_v9 = vrot.slane %v483_v5, 2  ;;  %v535_v10 = vadd.f32 %v534_v6, %v533_v2 }
 0x105   :  { %v493_v13 = vrot.slane %v492_v7, 2  ;;  %v544_v14 = vadd.f32 %v543_v8, %v542_v4 }
 0x106   :  { %v485_v11 = vadd.f32 %v484_v9, %v483_v5  ;;  %v536_v12 = vrot.slane %v535_v10, 2 }
 0x107   :  { %v494_v17 = vadd.f32 %v493_v13, %v492_v7  ;;  %v545_v18 = vrot.slane %v544_v14, 2 }
 0x108   :  { %v486_v15 = vrot.slane %v485_v11, 1  ;;  %v537_v16 = vadd.f32 %v536_v12, %v535_v10 }
 0x109   :  { %v495_v22 = vrot.slane %v494_v17, 1  ;;  %v546_v23 = vadd.f32 %v545_v18, %v544_v14 }
 0x10a   :  { %v3628_v19 = vadd.f32 %v486_v15, %v485_v11  ;;  %v538_v20 = vrot.slane %v537_v16, 1 }
 0x10b   :  { %v3644_v26 = vadd.f32 %v495_v22, %v494_v17  ;;  %v547_v27 = vrot.slane %v546_v23, 1 }
 0x10c   :  { %577 = vrot.lane.b32.xlu1 %v3628_v19, %s3489_s1  ;;  %568 = vrot.lane.b32.xlu0 %v3628_v19, %s3490_s24  ;;  %v3634_v21 = vadd.f32 %v538_v20, %v537_v16 }
 0x10d   :  { %v3666_v41 = vadd.f32 %v547_v27, %v546_v23 }
 0x110   :  { %581 = vrot.lane.b32.xlu1 %v3634_v21, %s3489_s1  ;;  %585 = vrot.lane.b32.xlu0 %v3628_v19, %s3491_s25 }
 0x111   :  { %v3640_v24 = vpop.f32.mrb[8].mxu1 }
 0x112   :  { %v3642_v25 = vpop.f32.mrb[9].mxu1  ;;  %v517_v31 = vmul.f32 %v3640_v24, %v3640_v24 }
 0x113   :  { %v3646_v29 = vpop.f32.mrb[10].mxu1  ;;  %v518_v37 = vmul.f32 %v3642_v25, %v3642_v25 }
 0x114   :  { %v497_v33 = vadd.f32 %v3646_v29, %v3640_v24  ;;  %v521_v35 = vmul.f32 %v3646_v29, %v3646_v29  ;;  %589 = vrot.lane.b32.xlu1 %v3634_v21, %s3491_s25  ;;  %596 = vrot.lane.b32.xlu0 %v3644_v26, %s3490_s24  ;;  %v3658_v36 = vpop.f32.mrb[11].mxu1 }
 0x115   :  { %v506_v38 = vadd.f32 %v3658_v36, %v3642_v25  ;;  %v522_v39 = vmul.f32 %v3658_v36, %v3658_v36 }
 0x116   :  { %v549_v40 = vadd.f32 %v521_v35, %v517_v31 }
 0x117   :  { %v558_v42 = vadd.f32 %v522_v39, %v518_v37 }
 0x118   :  { %601 = vrot.lane.b32.xlu1 %v3666_v41, %s3490_s24  ;;  %605 = vrot.lane.b32.xlu0 %v3644_v26, %s3489_s1 }
 0x119   :  { %v3672_v43 = vpop.f32.mrb[12].mxu1 }
 0x11a   :  { %v498_v45 = vadd.f32 %v497_v33, %v3672_v43  ;;  %v525_v46 = vmul.f32 %v3672_v43, %v3672_v43  ;;  %v3677_v47 = vpop.f32.mrb[13].mxu1 }
 0x11b   :  { %v507_v49 = vadd.f32 %v506_v38, %v3677_v47  ;;  %v526_v50 = vmul.f32 %v3677_v47, %v3677_v47  ;;  %v3682_v51 = vpop.f32.mrb[14].mxu1 }
 0x11c   :  { %v550_v52 = vadd.f32 %v549_v40, %v525_v46  ;;  %v499_v54 = vadd.f32 %v498_v45, %v3682_v51  ;;  %v529_v55 = vmul.f32 %v3682_v51, %v3682_v51  ;;  %609 = vrot.lane.b32.xlu1 %v3666_v41, %s3489_s1  ;;  %573 = vrot.lane.b32.xlu0 %v3634_v21, %s3490_s24  ;;  %v3691_v56 = vpop.f32.mrb[15].mxu1 }
 0x11d   :  { %v559_v57 = vadd.f32 %v558_v42, %v526_v50  ;;  %v508_v59 = vadd.f32 %v507_v49, %v3691_v56  ;;  %v530_v60 = vmul.f32 %v3691_v56, %v3691_v56 }
 0x11e   :  { %v500_v61 = vrot.slane %v499_v54, 4  ;;  %v551_v62 = vadd.f32 %v550_v52, %v529_v55 }
 0x11f   :  { %v560_v63 = vadd.f32 %v559_v57, %v530_v60  ;;  %v509_v2 = vrot.slane %v508_v59, 4 }
 0x120   :  { %v501_v0 = vadd.f32 %v500_v61, %v499_v54  ;;  %v552_v1 = vrot.slane %v551_v62, 4  ;;  %617 = vrot.lane.b32.xlu1 %v3666_v41, %s3491_s25  ;;  %613 = vrot.lane.b32.xlu0 %v3644_v26, %s3491_s25 }
 0x121   :  { %v561_v5 = vrot.slane %v560_v63, 4  ;;  %v510_v8 = vadd.f32 %v509_v2, %v508_v59 }
 0x122   :  { %v502_v3 = vrot.slane %v501_v0, 2  ;;  %v553_v4 = vadd.f32 %v552_v1, %v551_v62 }
 0x123   :  { %v562_v9 = vadd.f32 %v561_v5, %v560_v63  ;;  %v511_v12 = vrot.slane %v510_v8, 2 }
 0x124   :  { %v503_v6 = vadd.f32 %v502_v3, %v501_v0  ;;  %v554_v7 = vrot.slane %v553_v4, 2 }
 0x125   :  { %v563_v15 = vrot.slane %v562_v9, 2  ;;  %v512_v17 = vadd.f32 %v511_v12, %v510_v8 }
 0x126   :  { %v504_v10 = vrot.slane %v503_v6, 1  ;;  %v555_v11 = vadd.f32 %v554_v7, %v553_v4 }
 0x127   :  { %v564_v18 = vadd.f32 %v563_v15, %v562_v9  ;;  %v513_v20 = vrot.slane %v512_v17, 1 }
 0x128   :  { %v505_v13 = vadd.f32 %v504_v10, %v503_v6  ;;  %v556_v14 = vrot.slane %v555_v11, 1 }
 0x129   :  { %v565_v22 = vrot.slane %v564_v18, 1  ;;  %v514_v23 = vadd.f32 %v513_v20, %v512_v17 }
 0x12a   :  { %624 = vrot.lane.b32.xlu0 %v505_v13, %s3490_s24  ;;  %v557_v16 = vadd.f32 %v556_v14, %v555_v11 }
 0x12b   :  { %v566_v27 = vadd.f32 %v565_v22, %v564_v18 }
 0x12c   :  { %629 = vrot.lane.b32.xlu1 %v557_v16, %s3490_s24 }
 0x12e   :  { %633 = vrot.lane.b32.xlu0 %v505_v13, %s3489_s1 }
 0x130   :  { %637 = vrot.lane.b32.xlu1 %v557_v16, %s3489_s1 }
 0x132   :  { %641 = vrot.lane.b32.xlu0 %v505_v13, %s3491_s25 }
 0x134   :  { %645 = vrot.lane.b32.xlu1 %v557_v16, %s3491_s25 }
 0x136   :  { %652 = vrot.lane.b32.xlu0 %v514_v23, %s3490_s24 }
 0x138   :  { %657 = vrot.lane.b32.xlu1 %v566_v27, %s3490_s24 }
 0x13a   :  { %661 = vrot.lane.b32.xlu0 %v514_v23, %s3489_s1 }
 0x13c   :  { %665 = vrot.lane.b32.xlu1 %v566_v27, %s3489_s1 }
 0x13e   :  { %669 = vrot.lane.b32.xlu0 %v514_v23, %s3491_s25 }
 0x140   :  { %673 = vrot.lane.b32.xlu1 %v566_v27, %s3491_s25 }
 0x17e   :  { %v578_v31 = vpop.permute.xlu1 %577  ;;  %v569_v33 = vpop.permute.xlu0 %568 }
 0x17f   :  { %v571_v39 = vadd.f32 %v569_v33, %v3628_v19 }
 0x181   :  { %v580_v45 = vadd.f32 %v578_v31, %v571_v39 }
 0x182   :  { %v582_v35 = vpop.permute.xlu1 %581  ;;  %v586_v37 = vpop.permute.xlu0 %585 }
 0x183   :  { %v588_v50 = vadd.f32 %v586_v37, %v580_v45 }
 0x185   :  { %v593_v55 = vadd.f32 %v588_v50, %v3644_v26 }
 0x186   :  { %v597_v38 = vpop.permute.xlu0 %596  ;;  %v590_v40 = vpop.permute.xlu1 %589 }
 0x187   :  { %v599_v61 = vadd.f32 %v597_v38, %v593_v55  ;;  %v682_v55 = vld [vmem:[%s4484_s5 + $0x1] sm:$0x1] }
 0x18a   :  { %v606_v42 = vpop.permute.xlu0 %605  ;;  %v602_v46 = vpop.permute.xlu1 %601 }
 0x18b   :  { %v608_v0 = vadd.f32 %v606_v42, %v599_v61 }
 0x18e   :  { %v574_v49 = vpop.permute.xlu0 %573  ;;  %v610_v59 = vpop.permute.xlu1 %609 }
 0x18f   :  { %v576_v52 = vadd.f32 %v574_v49, %v3634_v21 }
 0x191   :  { %v584_v54 = vadd.f32 %v582_v35, %v576_v52 }
 0x192   :  { %v614_v63 = vpop.permute.xlu0 %613  ;;  %v618_v1 = vpop.permute.xlu1 %617 }
 0x193   :  { %v592_v57 = vadd.f32 %v590_v40, %v584_v54  ;;  %v616_v3 = vadd.f32 %v614_v63, %v608_v0 }
 0x195   :  { %v594_v60 = vadd.f32 %v592_v57, %v3666_v41  ;;  %v621_v6 = vadd.f32 %v616_v3, %v505_v13 }
 0x197   :  { %v604_v62 = vadd.f32 %v602_v46, %v594_v60  ;;  %v717_v60 = vlaneseq }
 0x199   :  { %v612_v19 = vadd.f32 %v610_v59, %v604_v62  ;;  %v718_v61 = vshrl.u32 %v717_v60, 7 }
 0x19b   :  { %v620_v2 = vadd.f32 %v618_v1, %v612_v19  ;;  %v3729_v19 = vsub.s32 0, %v718_v61 }
 0x19c   :  { %v625_v4 = vpop.permute.xlu0 %624 }
 0x19d   :  { %v622_v7 = vadd.f32 %v620_v2, %v557_v16  ;;  %v627_v8 = vadd.f32 %v625_v4, %v621_v6 }
 0x19e   :  { %v630_v5 = vpop.permute.xlu1 %629 }
 0x19f   :  { %v632_v26 = vadd.f32 %v630_v5, %v622_v7 }
 0x1a0   :  { %v634_v21 = vpop.permute.xlu0 %633 }
 0x1a1   :  { %v636_v10 = vadd.f32 %v634_v21, %v627_v8 }
 0x1a2   :  { %v638_v9 = vpop.permute.xlu1 %637 }
 0x1a3   :  { %v640_v12 = vadd.f32 %v638_v9, %v632_v26 }
 0x1a4   :  { %v642_v11 = vpop.permute.xlu0 %641 }
 0x1a5   :  { %v644_v41 = vadd.f32 %v642_v11, %v636_v10 }
 0x1a6   :  { %v646_v14 = vpop.permute.xlu1 %645 }
 0x1a7   :  { %v648_v15 = vadd.f32 %v646_v14, %v640_v12  ;;  %v649_v18 = vadd.f32 %v644_v41, %v514_v23  ;;  %v681_v23 = vld [vmem:[%s4484_s5] sm:$0x1] }
 0x1a8   :  { %v653_v17 = vpop.permute.xlu0 %652 }
 0x1a9   :  { %v650_v22 = vadd.f32 %v648_v15, %v566_v27  ;;  %v655_v33 = vadd.f32 %v653_v17, %v649_v18 }
 0x1aa   :  { %v658_v20 = vpop.permute.xlu1 %657 }
 0x1ab   :  { %v660_v37 = vadd.f32 %v658_v20, %v650_v22 }
 0x1ac   :  { %v662_v31 = vpop.permute.xlu0 %661 }
 0x1ad   :  { %v664_v13 = vadd.f32 %v662_v31, %v655_v33 }
 0x1ae   :  { %v666_v35 = vpop.permute.xlu1 %665 }
 0x1af   :  { %v668_v38 = vadd.f32 %v666_v35, %v660_v37 }
 0x1b0   :  { %v670_v16 = vpop.permute.xlu0 %669 }
 0x1b1   :  { %v672_v39 = vadd.f32 %v670_v16, %v664_v13 }
 0x1b2   :  { %v674_v40 = vpop.permute.xlu1 %673 }
 0x1b3   :  { %v677_v42 = vmul.f32 0.001953125, %v672_v39  ;;  %v676_v45 = vadd.f32 %v674_v40, %v668_v38 }
 0x1b5   :  { %v679_v46 = vmul.f32 %v677_v42, %v677_v42  ;;  %v678_v49 = vmul.f32 0.001953125, %v676_v45 }
 0x1b7   :  { %v680_v50 = vsub.f32 %v678_v49, %v679_v46 }
 0x1b9   :  { %v683_v52 = vadd.f32 1e-05, %v680_v50 }
 0x1bb   :  { %3456 = vrsqrt.f32 %v683_v52 }
 0x1c5   :  { %v3457_v27 = vpop.eup %3456 }
 0x1c6   :  { %v685_v54 = vmul.f32 %v3457_v27, %v681_v23 }
 0x1c8   :  { %692 = vrot.lane.b32.xlu1 %v685_v54, %s3489_s1  ;;  %689 = vrot.lane.b32.xlu0 %v685_v54, %s3491_s25  ;;  %v686_v57 = vmul.f32 %v685_v54, %v677_v42 }
 0x1ca   :  { %v687_v59 = vsub.f32 %v682_v55, %v686_v57 }
 0x1cc   :  { %695 = vrot.lane.b32.xlu0 %v685_v54, %s3490_s24  ;;  %705 = vrot.lane.b32.xlu1 %v687_v59, %s3491_s25 }
 0x1d0   :  { %708 = vrot.lane.b32.xlu0 %v687_v59, %s3489_s1  ;;  %711 = vrot.lane.b32.xlu1 %v687_v59, %s3490_s24 }
 0x23a   :  { %v693_v62 = vpop.permute.xlu1 %692  ;;  %v690_v63 = vpop.permute.xlu0 %689 }
 0x23b   :  { %v699_v0 = vsel %vm698_vm3, %v685_v54, %v690_v63 }
 0x23c   :  { %v701_v1 = vsel %vm700_vm4, %v699_v0, %v693_v62 }
 0x23e   :  { %v696_v2 = vpop.permute.xlu0 %695  ;;  %v706_v3 = vpop.permute.xlu1 %705 }
 0x23f   :  { %v703_v4 = vsel %vm702_vm5, %v701_v1, %v696_v2  ;;  %v714_v6 = vsel %vm698_vm3, %v687_v59, %v706_v3 }
 0x240   :  { %v720_v5 = vrot.slane %v703_v4, %v3729_v19 }
 0x242   :  { %v709_v7 = vpop.permute.xlu0 %708  ;;  %v712_v21 = vpop.permute.xlu1 %711  ;;  %v723_v8 = vmul.f32 %v720_v5, %v3640_v24  ;;  %v727_v9 = vmul.f32 %v720_v5, %v3646_v29  ;;  %v731_v26 = vmul.f32 %v720_v5, %v3672_v43  ;;  %v735_v11 = vmul.f32 %v720_v5, %v3682_v51 }
 0x243   :  { %v715_v10 = vsel %vm700_vm4, %v714_v6, %v709_v7  ;;  %v721_v12 = vmul.f32 %v3588_v28, %v720_v5  ;;  %v725_v41 = vmul.f32 %v3592_v32, %v720_v5  ;;  %v729_v15 = vmul.f32 %v3604_v44, %v720_v5 }
 0x244   :  { %v716_v14 = vsel %vm702_vm5, %v715_v10, %v712_v21  ;;  %v733_v17 = vmul.f32 %v3615_v53, %v720_v5  ;;  %v3746_v24 = vmul.f32 %v720_v5, %v3642_v25  ;;  %v3752_v43 = vmul.f32 %v720_v5, %v3658_v36 }
 0x245   :  { %v3749_v29 = vrot.slane %v716_v14, %v3729_v19  ;;  %v3755_v51 = vmul.f32 %v720_v5, %v3677_v47  ;;  %v3758_v28 = vmul.f32 %v720_v5, %v3691_v56  ;;  %v3761_v32 = vmul.f32 %v3590_v30, %v720_v5 }
 0x246   :  { %v3764_v44 = vmul.f32 %v3594_v34, %v720_v5  ;;  %v3767_v53 = vmul.f32 %v3610_v48, %v720_v5  ;;  %v3770_v25 = vmul.f32 %v3620_v58, %v720_v5 }
 0x247   :  { %v743_v36 = vadd.f32 %v3749_v29, %v723_v8  ;;  %v747_v47 = vadd.f32 %v3749_v29, %v727_v9  ;;  %v751_v56 = vadd.f32 %v3749_v29, %v731_v26  ;;  %v755_v18 = vadd.f32 %v3749_v29, %v735_v11 }
 0x248   :  { %v741_v30 = vadd.f32 %v3749_v29, %v721_v12  ;;  %v745_v34 = vadd.f32 %v3749_v29, %v725_v41  ;;  %v749_v48 = vadd.f32 %v3749_v29, %v729_v15  ;;  %v753_v20 = vadd.f32 %v3749_v29, %v733_v17 }
 0x249   :  { %v759_v58 = vmax.f32 %v743_v36, 0.0  ;;  %v763_v22 = vmax.f32 %v747_v47, 0.0  ;;  %v767_v31 = vmax.f32 %v751_v56, 0.0  ;;  %v771_v33 = vmax.f32 %v755_v18, 0.0 }
 0x24a   :  { %v757_v35 = vmax.f32 %v741_v30, 0.0  ;;  %v761_v37 = vmax.f32 %v745_v34, 0.0  ;;  %v765_v13 = vmax.f32 %v749_v48, 0.0  ;;  %v769_v16 = vmax.f32 %v753_v20, 0.0 }
 0x24b   :  { %v779_v38 = vrot.slane %v759_v58, 2  ;;  %v795_v39 = vrot.slane %v763_v22, 2  ;;  %v811_v40 = vrot.slane %v767_v31, 2  ;;  %v827_v42 = vrot.slane %v771_v33, 2 }
 0x24c   :  { %v777_v45 = vrot.slane %v757_v35, 2  ;;  %v793_v46 = vrot.slane %v761_v37, 2  ;;  %v809_v49 = vrot.slane %v765_v13, 2  ;;  %v825_v50 = vrot.slane %v769_v16, 2 }
 0x24d   :  { %v787_v52 = vmax.f32 %v759_v58, %v779_v38  ;;  %v803_v23 = vmax.f32 %v763_v22, %v795_v39  ;;  %v819_v27 = vmax.f32 %v767_v31, %v811_v40  ;;  %v835_v54 = vmax.f32 %v771_v33, %v827_v42 }
 0x24e   :  { %v785_v55 = vmax.f32 %v757_v35, %v777_v45  ;;  %v801_v57 = vmax.f32 %v761_v37, %v793_v46  ;;  %v817_v59 = vmax.f32 %v765_v13, %v809_v49  ;;  %v833_v60 = vmax.f32 %v769_v16, %v825_v50 }
 0x24f   :  { %v843_v61 = vrot.slane %v787_v52, 2  ;;  %v855_v62 = vrot.slane %v803_v23, 4  ;;  %v863_v63 = vrot.slane %v803_v23, 6  ;;  %v875_v0 = vrot.slane %v819_v27, 2 }
 0x250   :  { %v887_v1 = vrot.slane %v835_v54, 4  ;;  %v895_v2 = vrot.slane %v835_v54, 6  ;;  %v841_v3 = vrot.slane %v785_v55, 2  ;;  %v853_v4 = vrot.slane %v801_v57, 4 }
 0x251   :  { %v904_v5 = vsel %vm901_vm6, %v787_v52, %v843_v61  ;;  %v918_v6 = vsel %vm901_vm6, %v819_v27, %v875_v0  ;;  %v861_v7 = vrot.slane %v801_v57, 6  ;;  %v873_v21 = vrot.slane %v817_v59, 2 }
 0x252   :  { %v909_v8 = vsel %vm906_vm7, %v904_v5, %v855_v62  ;;  %v922_v9 = vsel %vm906_vm7, %v918_v6, %v887_v1  ;;  %v885_v26 = vrot.slane %v833_v60, 4  ;;  %v893_v10 = vrot.slane %v833_v60, 6 }
 0x253   :  { %v3785_v11 = vsel %vm911_vm8, %v909_v8, %v863_v63  ;;  %v3788_v12 = vsel %vm911_vm8, %v922_v9, %v895_v2  ;;  %v902_v41 = vsel %vm901_vm6, %v785_v55, %v841_v3  ;;  %v916_v14 = vsel %vm901_vm6, %v817_v59, %v873_v21 }
 0x254   :  { %v3201_v15 = vpack.i.bf16 %v3788_v12, %v3785_v11  ;;  %v907_v17 = vsel %vm906_vm7, %v902_v41, %v853_v4  ;;  %v920_v36 = vsel %vm906_vm7, %v916_v14, %v885_v26  ;;  %v744_v47 = vadd.f32 %v3749_v29, %v3746_v24 }
 0x255   :  { %v3799_v56 = vsel %vm911_vm8, %v907_v17, %v861_v7  ;;  %v3802_v18 = vsel %vm911_vm8, %v920_v36, %v893_v10  ;;  %v748_v30 = vadd.f32 %v3749_v29, %v3752_v43  ;;  %v752_v34 = vadd.f32 %v3749_v29, %v3755_v51  ;;  %v3276_v36 = vld [vmem:[%s4481_s2 + $0x100] ss:$8 sps:$4 sm:$0xff]  }
 0x256   :  { %3202 = vrot.lane.b32.xlu0 %v3201_v15, %s3490_s24  ;;  %v3206_v48 = vpack.i.bf16 %v3802_v18, %v3799_v56  ;;  %v756_v24 = vadd.f32 %v3749_v29, %v3758_v28  ;;  %v760_v20 = vmax.f32 %v744_v47, 0.0  ;;  %v742_v58 = vadd.f32 %v3749_v29, %v3761_v32  ;;  %v3278_v47 = vld [vmem:[%s4481_s2 + $0x104] ss:$8 sps:$4 sm:$0xff]  }
 0x257   :  { %v764_v22 = vmax.f32 %v748_v30, 0.0  ;;  %v768_v31 = vmax.f32 %v752_v34, 0.0  ;;  %v746_v43 = vadd.f32 %v3749_v29, %v3764_v44  ;;  %v750_v51 = vadd.f32 %v3749_v29, %v3767_v53  ;;  %v3281_v34 = vld [vmem:[%s4481_s2 + $0x114] ss:$8 sps:$4 sm:$0xff]   ;;  %1269 = vmatprep.subr.bf16.mxu0 %v3278_v47 }
 0x258   :  { %3207 = vrot.lane.b32.xlu1 %v3206_v48, %s3490_s24  ;;  %v772_v33 = vmax.f32 %v756_v24, 0.0  ;;  %v780_v35 = vrot.slane %v760_v20, 2  ;;  %v754_v37 = vadd.f32 %v3749_v29, %v3770_v25  ;;  %v758_v28 = vmax.f32 %v742_v58, 0.0  ;;  %1270 = vmatpush1.bf16.msra.mxu0 %v3276_v36  ;;  %v3279_v48 = vld [vmem:[%s4481_s2 + $0x110] ss:$8 sps:$4 sm:$0xff]  }
 0x259   :  { %v796_v13 = vrot.slane %v764_v22, 2  ;;  %v812_v16 = vrot.slane %v768_v31, 2  ;;  %v762_v38 = vmax.f32 %v746_v43, 0.0  ;;  %v766_v32 = vmax.f32 %v750_v51, 0.0  ;;  %1271 = vmatprep.subr.bf16.mxu0 %v3281_v34  ;;  %v3284_v24 = vld [vmem:[%s4481_s2 + $0x124] ss:$8 sps:$4 sm:$0xff]  }
 0x25a   :  { %v788_v39 = vmax.f32 %v760_v20, %v780_v35  ;;  %v828_v40 = vrot.slane %v772_v33, 2  ;;  %v770_v42 = vmax.f32 %v754_v37, 0.0  ;;  %v778_v45 = vrot.slane %v758_v28, 2  ;;  %v3282_v20 = vld [vmem:[%s4481_s2 + $0x120] ss:$8 sps:$4 sm:$0xff]  }
 0x25b   :  { %v804_v44 = vmax.f32 %v764_v22, %v796_v13  ;;  %v820_v46 = vmax.f32 %v768_v31, %v812_v16  ;;  %v794_v49 = vrot.slane %v762_v38, 2  ;;  %v810_v53 = vrot.slane %v766_v32, 2  ;;  %v3287_v58 = vld [vmem:[%s4481_s2 + $0x134] ss:$8 sps:$4 sm:$0xff]   ;;  %v3285_v22 = vld [vmem:[%s4481_s2 + $0x130] ss:$8 sps:$4 sm:$0xff]  }
 0x25c   :  { %v836_v50 = vmax.f32 %v772_v33, %v828_v40  ;;  %v844_v52 = vrot.slane %v788_v39, 2  ;;  %v786_v23 = vmax.f32 %v758_v28, %v778_v45  ;;  %v826_v27 = vrot.slane %v770_v42, 2  ;;  %1272 = vmatpush1.bf16.msra.mxu0 %v3279_v48  ;;  %v3290_v31 = vld [vmem:[%s4481_s2 + $0x144] ss:$8 sps:$4 sm:$0xff]   ;;  %v3288_v43 = vld [vmem:[%s4481_s2 + $0x140] ss:$8 sps:$4 sm:$0xff]  }
 0x25d   :  { %v856_v54 = vrot.slane %v804_v44, 4  ;;  %v864_v55 = vrot.slane %v804_v44, 6  ;;  %v876_v29 = vrot.slane %v820_v46, 2  ;;  %v802_v25 = vmax.f32 %v762_v38, %v794_v49  ;;  %1273 = vmatprep.subr.bf16.mxu0 %v3284_v24  ;;  %v3293_v51 = vld [vmem:[%s4481_s2 + $0x154] ss:$8 sps:$4 sm:$0xff]  }
 0x25e   :  { %v888_v57 = vrot.slane %v836_v50, 4  ;;  %v896_v59 = vrot.slane %v836_v50, 6  ;;  %v905_v60 = vsel %vm901_vm6, %v788_v39, %v844_v52  ;;  %v818_v61 = vmax.f32 %v766_v32, %v810_v53  ;;  %v3291_v33 = vld [vmem:[%s4481_s2 + $0x150] ss:$8 sps:$4 sm:$0xff]   ;;  %v3296_v35 = vld [vmem:[%s4481_s2 + $0x164] ss:$8 sps:$4 sm:$0xff]  }
 0x25f   :  { %v910_v62 = vsel %vm906_vm7, %v905_v60, %v856_v54  ;;  %v919_v63 = vsel %vm901_vm6, %v820_v46, %v876_v29  ;;  %v834_v0 = vmax.f32 %v770_v42, %v826_v27  ;;  %v842_v1 = vrot.slane %v786_v23, 2  ;;  %v3294_v37 = vld [vmem:[%s4481_s2 + $0x160] ss:$8 sps:$4 sm:$0xff]   ;;  %v3299_v28 = vld [vmem:[%s4481_s2 + $0x174] ss:$8 sps:$4 sm:$0xff]  }
 0x260   :  { %v3826_v2 = vsel %vm911_vm8, %v910_v62, %v864_v55  ;;  %v923_v3 = vsel %vm906_vm7, %v919_v63, %v888_v57  ;;  %v854_v4 = vrot.slane %v802_v25, 4  ;;  %v874_v6 = vrot.slane %v818_v61, 2  ;;  %1274 = vmatpush1.bf16.msra.mxu0 %v3282_v20  ;;  %v3297_v13 = vld [vmem:[%s4481_s2 + $0x170] ss:$8 sps:$4 sm:$0xff]   ;;  %v3302_v16 = vld [vmem:[%s4481_s2 + $0x184] ss:$8 sps:$4 sm:$0xff]  }
 0x261   :  { %v3830_v5 = vsel %vm911_vm8, %v923_v3, %v896_v59  ;;  %v886_v7 = vrot.slane %v834_v0, 4  ;;  %v862_v8 = vrot.slane %v802_v25, 6  ;;  %v903_v9 = vsel %vm901_vm6, %v786_v23, %v842_v1  ;;  %1275 = vmatprep.subr.bf16.mxu0 %v3287_v58  ;;  %v3300_v38 = vld [vmem:[%s4481_s2 + $0x180] ss:$8 sps:$4 sm:$0xff]   ;;  %v3305_v32 = vld [vmem:[%s4481_s2 + $0x194] ss:$8 sps:$4 sm:$0xff]  }
 0x262   :  { %v3211_v21 = vpack.i.bf16 %v3830_v5, %v3826_v2  ;;  %v894_v26 = vrot.slane %v834_v0, 6  ;;  %v908_v10 = vsel %vm906_vm7, %v903_v9, %v854_v4  ;;  %v917_v41 = vsel %vm901_vm6, %v818_v61, %v874_v6  ;;  %v3303_v39 = vld [vmem:[%s4481_s2 + $0x190] ss:$8 sps:$4 sm:$0xff]   ;;  %v3308_v40 = vld [vmem:[%s4481_s2 + $0x1a4] ss:$8 sps:$4 sm:$0xff]  }
 0x263   :  { %v3839_v14 = vsel %vm911_vm8, %v908_v10, %v862_v8  ;;  %v921_v15 = vsel %vm906_vm7, %v917_v41, %v886_v7  ;;  %v3306_v42 = vld [vmem:[%s4481_s2 + $0x1a0] ss:$8 sps:$4 sm:$0xff]   ;;  %v3311_v45 = vld [vmem:[%s4481_s2 + $0x1b4] ss:$8 sps:$4 sm:$0xff]   ;;  %v3309_v44 = vld [vmem:[%s4481_s2 + $0x1b0] ss:$8 sps:$4 sm:$0xff]  }
 0x264   :  { %3212 = vrot.lane.b32.xlu0 %v3211_v21, %s3490_s24  ;;  %v3843_v17 = vsel %vm911_vm8, %v921_v15, %v894_v26  ;;  %1276 = vmatpush1.bf16.msra.mxu0 %v3285_v22  ;;  %v3314_v46 = vld [vmem:[%s4481_s2 + $0x1c4] ss:$8 sps:$4 sm:$0xff]   ;;  %v3312_v49 = vld [vmem:[%s4481_s2 + $0x1c0] ss:$8 sps:$4 sm:$0xff]   ;;  %v3315_v53 = vld [vmem:[%s4481_s2 + $0x1d0] ss:$8 sps:$4 sm:$0xff]  }
 0x265   :  { %v3216_v30 = vpack.i.bf16 %v3843_v17, %v3839_v14  ;;  %1277 = vmatprep.subr.bf16.mxu0 %v3290_v31  ;;  %v3317_v50 = vld [vmem:[%s4481_s2 + $0x1d4] ss:$8 sps:$4 sm:$0xff]   ;;  %v3318_v0 = vld [vmem:[%s4481_s2 + $0x1e0] ss:$8 sps:$4 sm:$0xff]   ;;  %v3321_v8 = vld [vmem:[%s4481_s2 + $0x1f0] ss:$8 sps:$4 sm:$0xff]  }
 0x266   :  { %v3323_v21 = vld [vmem:[%s4481_s2 + $0x1f4] ss:$8 sps:$4 sm:$0xff]  }
 0x267   :  { %3217 = vrot.lane.b32.xlu1 %v3216_v30, %s3490_s24 }
 0x268   :  { %1278 = vmatpush1.bf16.msra.mxu0 %v3288_v43 }
 0x269   :  { %1279 = vmatprep.subr.bf16.mxu0 %v3293_v51 }
 0x26c   :  { %1280 = vmatpush1.bf16.msra.mxu0 %v3291_v33 }
 0x26d   :  { %1281 = vmatprep.subr.bf16.mxu0 %v3296_v35 }
 0x270   :  { %1282 = vmatpush1.bf16.msra.mxu0 %v3294_v37 }
 0x271   :  { %1283 = vmatprep.subr.bf16.mxu0 %v3299_v28 }
 0x274   :  { %1284 = vmatpush1.bf16.msra.mxu0 %v3297_v13 }
 0x275   :  { %1285 = vmatprep.subr.bf16.mxu0 %v3302_v16 }
 0x278   :  { %1286 = vmatpush1.bf16.msra.mxu0 %v3300_v38 }
 0x279   :  { %1287 = vmatprep.subr.bf16.mxu0 %v3305_v32 }
 0x27c   :  { %1288 = vmatpush1.bf16.msra.mxu0 %v3303_v39 }
 0x27d   :  { %1289 = vmatprep.subr.bf16.mxu0 %v3308_v40 }
 0x280   :  { %1290 = vmatpush1.bf16.msra.mxu0 %v3306_v42 }
 0x281   :  { %1291 = vmatprep.subr.bf16.mxu0 %v3311_v45 }
 0x284   :  { %1292 = vmatpush1.bf16.msra.mxu0 %v3309_v44 }
 0x285   :  { %1293 = vmatprep.subr.bf16.mxu0 %v3314_v46 }
 0x288   :  { %1294 = vmatpush1.bf16.msra.mxu0 %v3312_v49  ;;  %v3324_v49 = vld [vmem:[%s4481_s2] ss:$8 sps:$4 sm:$0xff]  }
 0x289   :  { %1295 = vmatprep.subr.bf16.mxu0 %v3317_v50 }
 0x28c   :  { %1296 = vmatpush1.bf16.msra.mxu0 %v3315_v53 }
 0x2c8   :  { %v3203_v52 = vpop.permute.xlu0 %3202 }
 0x2c9   :  { %v3205_v23 = vunpack.i.h.bf16 %v3203_v52  ;;  %v3204_v27 = vunpack.i.l.bf16 %v3203_v52  ;;  %v3439_v52 = vld [vmem:[%s4482_s3 + $0x98] sm:$0xff]  }
 0x2ca   :  { %v3208_v54 = vpop.permute.xlu1 %3207 }
 0x2cb   :  { %v957_v55 = vmax.f32 %v3788_v12, %v3205_v23  ;;  %v956_v29 = vmax.f32 %v3785_v11, %v3204_v27  ;;  %v3210_v25 = vunpack.i.h.bf16 %v3208_v54  ;;  %v3209_v57 = vunpack.i.l.bf16 %v3208_v54  ;;  %v3320_v11 = vld [vmem:[%s4481_s2 + $0x1e4] ss:$8 sps:$4 sm:$0xff]   ;;  %v3329_v23 = vld [vmem:[%s4481_s2 + $0x14] ss:$8 sps:$4 sm:$0xff]   ;;  %v3327_v27 = vld [vmem:[%s4481_s2 + $0x10] ss:$8 sps:$4 sm:$0xff]  }
 0x2cc   :  { %1297 = vmatprep.subr.bf16.mxu0 %v3320_v11  ;;  %v3332_v54 = vld [vmem:[%s4481_s2 + $0x24] ss:$8 sps:$4 sm:$0xff]   ;;  %v3345_v11 = vld [vmem:[%s4481_s2 + $0x70] ss:$8 sps:$4 sm:$0xff]  }
 0x2cd   :  { %v937_v59 = vmax.f32 %v3802_v18, %v3210_v25  ;;  %v936_v60 = vmax.f32 %v3799_v56, %v3209_v57  ;;  %v3221_v61 = vpack.i.bf16 %v957_v55, %v956_v29  ;;  %1298 = vmatpush1.bf16.msra.mxu0 %v3318_v0  ;;  %v3333_v25 = vld [vmem:[%s4481_s2 + $0x30] ss:$8 sps:$4 sm:$0xff]   ;;  %v3338_v57 = vld [vmem:[%s4481_s2 + $0x44] ss:$8 sps:$4 sm:$0xff]   ;;  %v3347_v0 = vld [vmem:[%s4481_s2 + $0x74] ss:$8 sps:$4 sm:$0xff]  }
 0x2ce   :  { %1299 = vmatprep.subr.bf16.mxu0 %v3323_v21  ;;  %v3362_v21 = vld [vmem:[%s4481_s2 + $0xc4] ss:$8 sps:$4 sm:$0xff]  }
 0x2cf   :  { %3222 = vrot.lane.b32.xlu0 %v3221_v61, %s3490_s24  ;;  %v3226_v62 = vpack.i.bf16 %v937_v59, %v936_v60  ;;  %v3339_v61 = vld [vmem:[%s4481_s2 + $0x50] ss:$8 sps:$4 sm:$0xff]  }
 0x2d1   :  { %3227 = vrot.lane.b32.xlu1 %v3226_v62, %s3490_s24  ;;  %1300 = vmatpush1.bf16.msra.mxu0 %v3321_v8  ;;  %v3344_v62 = vld [vmem:[%s4481_s2 + $0x64] ss:$8 sps:$4 sm:$0xff]   ;;  %v3360_v8 = vld [vmem:[%s4481_s2 + $0xc0] ss:$8 sps:$4 sm:$0xff]  }
 0x2d6   :  { %v3213_v63 = vpop.permute.xlu0 %3212 }
 0x2d7   :  { %v3215_v12 = vunpack.i.h.bf16 %v3213_v63  ;;  %v3214_v1 = vunpack.i.l.bf16 %v3213_v63  ;;  %v3342_v63 = vld [vmem:[%s4481_s2 + $0x60] ss:$8 sps:$4 sm:$0xff]  }
 0x2d9   :  { %v967_v56 = vmax.f32 %v3830_v5, %v3215_v12  ;;  %v966_v18 = vmax.f32 %v3826_v2, %v3214_v1  ;;  %v3218_v3 = vpop.permute.xlu1 %3217  ;;  %v3326_v2 = vld [vmem:[%s4481_s2 + $0x4] ss:$8 sps:$4 sm:$0xff]   ;;  %v3348_v1 = vld [vmem:[%s4481_s2 + $0x80] ss:$8 sps:$4 sm:$0xff]  }
 0x2da   :  { %v3220_v4 = vunpack.i.h.bf16 %v3218_v3  ;;  %v3219_v6 = vunpack.i.l.bf16 %v3218_v3  ;;  %1472 = vmatprep.subr.bf16.mxu0 %v3326_v2  ;;  %v3350_v12 = vld [vmem:[%s4481_s2 + $0x84] ss:$8 sps:$4 sm:$0xff]  }
 0x2db   :  { %v3231_v7 = vpack.i.bf16 %v967_v56, %v966_v18  ;;  %v3353_v56 = vld [vmem:[%s4481_s2 + $0x94] ss:$8 sps:$4 sm:$0xff]   ;;  %v3351_v18 = vld [vmem:[%s4481_s2 + $0x90] ss:$8 sps:$4 sm:$0xff]   ;;  %v3356_v3 = vld [vmem:[%s4481_s2 + $0xa4] ss:$8 sps:$4 sm:$0xff]  }
 0x2dc   :  { %v947_v9 = vmax.f32 %v3843_v17, %v3220_v4  ;;  %v946_v26 = vmax.f32 %v3839_v14, %v3219_v6  ;;  %v3354_v4 = vld [vmem:[%s4481_s2 + $0xa0] ss:$8 sps:$4 sm:$0xff]   ;;  %v3359_v6 = vld [vmem:[%s4481_s2 + $0xb4] ss:$8 sps:$4 sm:$0xff]   ;;  %v3368_v2 = vld [vmem:[%s4481_s2 + $0xe4] ss:$8 sps:$4 sm:$0xff]  }
 0x2dd   :  { %3232 = vrot.lane.b32.xlu0 %v3231_v7, %s3489_s1 }
 0x2de   :  { %v3236_v5 = vpack.i.bf16 %v947_v9, %v946_v26  ;;  %v3365_v9 = vld [vmem:[%s4481_s2 + $0xd4] ss:$8 sps:$4 sm:$0xff]   ;;  %v3363_v26 = vld [vmem:[%s4481_s2 + $0xd0] ss:$8 sps:$4 sm:$0xff]  }
 0x2e0   :  { %3237 = vrot.lane.b32.xlu1 %v3236_v5, %s3489_s1 }
 0x2e1   :  { %3242 = vrot.lane.b32.xlu0 %v3231_v7, %s3491_s25  ;;  %v3357_v7 = vld [vmem:[%s4481_s2 + $0xb0] ss:$8 sps:$4 sm:$0xff]  }
 0x2e4   :  { %3247 = vrot.lane.b32.xlu1 %v3236_v5, %s3491_s25  ;;  %v3366_v5 = vld [vmem:[%s4481_s2 + $0xe0] ss:$8 sps:$4 sm:$0xff]  }
 0x341   :  { %v3223_v10 = vpop.permute.xlu0 %3222 }
 0x342   :  { %v3225_v15 = vunpack.i.h.bf16 %v3223_v10  ;;  %v3224_v14 = vunpack.i.l.bf16 %v3223_v10  ;;  %v3371_v10 = vld [vmem:[%s4481_s2 + $0xf4] ss:$8 sps:$4 sm:$0xff]  }
 0x343   :  { %v3228_v41 = vpop.permute.xlu1 %3227 }
 0x344   :  { %v1019_v30 = vsel %vm698_vm3, %v957_v55, %v3225_v15  ;;  %v1018_v34 = vsel %vm698_vm3, %v956_v29, %v3224_v14  ;;  %v3230_v20 = vunpack.i.h.bf16 %v3228_v41  ;;  %v3229_v58 = vunpack.i.l.bf16 %v3228_v41  ;;  %v3330_v55 = vld [vmem:[%s4481_s2 + $0x20] ss:$8 sps:$4 sm:$0xff]   ;;  %v3335_v29 = vld [vmem:[%s4481_s2 + $0x34] ss:$8 sps:$4 sm:$0xff]   ;;  %v3369_v41 = vld [vmem:[%s4481_s2 + $0xf0] ss:$8 sps:$4 sm:$0xff]  }
 0x345   :  { %v3374_v15 = vld [vmem:[%s4481_s2 + $0x204] ss:$8 sps:$4 sm:$0xff]   ;;  %v3372_v14 = vld [vmem:[%s4481_s2 + $0x200] ss:$8 sps:$4 sm:$0xff]  }
 0x346   :  { %v1013_v38 = vsel %vm698_vm3, %v937_v59, %v3230_v20  ;;  %v1012_v32 = vsel %vm698_vm3, %v936_v60, %v3229_v58  ;;  %v3336_v59 = vld [vmem:[%s4481_s2 + $0x40] ss:$8 sps:$4 sm:$0xff]   ;;  %v3341_v60 = vld [vmem:[%s4481_s2 + $0x54] ss:$8 sps:$4 sm:$0xff]   ;;  %v3381_v20 = vld [vmem:[%s4481_s2 + $0x230] ss:$8 sps:$4 sm:$0xff]  }
 0x347   :  { %v3386_v58 = vld [vmem:[%s4481_s2 + $0x244] ss:$8 sps:$4 sm:$0xff]  }
 0x34f   :  { %v3233_v17 = vpop.permute.xlu0 %3232 }
 0x350   :  { %v3235_v36 = vunpack.i.h.bf16 %v3233_v17  ;;  %v3234_v47 = vunpack.i.l.bf16 %v3233_v17 }
 0x352   :  { %v3238_v48 = vpop.permute.xlu1 %3237  ;;  %v1020_v43 = vsel %vm700_vm4, %v1018_v34, %v3234_v47  ;;  %v1021_v51 = vsel %vm700_vm4, %v1019_v30, %v3235_v36  ;;  %v3377_v36 = vld [vmem:[%s4481_s2 + $0x214] ss:$8 sps:$4 sm:$0xff]   ;;  %v3375_v30 = vld [vmem:[%s4481_s2 + $0x210] ss:$8 sps:$4 sm:$0xff]   ;;  %v3380_v34 = vld [vmem:[%s4481_s2 + $0x224] ss:$8 sps:$4 sm:$0xff]  }
 0x353   :  { %v3243_v24 = vpop.permute.xlu0 %3242  ;;  %v3240_v33 = vunpack.i.h.bf16 %v3238_v48  ;;  %v3239_v35 = vunpack.i.l.bf16 %v3238_v48  ;;  %v3378_v48 = vld [vmem:[%s4481_s2 + $0x220] ss:$8 sps:$4 sm:$0xff]  }
 0x354   :  { %v3245_v22 = vunpack.i.h.bf16 %v3243_v24  ;;  %v3244_v31 = vunpack.i.l.bf16 %v3243_v24  ;;  %v3383_v24 = vld [vmem:[%s4481_s2 + $0x234] ss:$8 sps:$4 sm:$0xff]  }
 0x355   :  { %v1014_v42 = vsel %vm700_vm4, %v1012_v32, %v3239_v35  ;;  %v1015_v45 = vsel %vm700_vm4, %v1013_v38, %v3240_v33  ;;  %v3390_v33 = vld [vmem:[%s4481_s2 + $0x260] ss:$8 sps:$4 sm:$0xff]   ;;  %v3395_v35 = vld [vmem:[%s4481_s2 + $0x274] ss:$8 sps:$4 sm:$0xff]   ;;  %v3399_v38 = vld [vmem:[%s4481_s2 + $0x290] ss:$8 sps:$4 sm:$0xff]  }
 0x356   :  { %v1022_v37 = vsel %vm702_vm5, %v1020_v43, %v3244_v31  ;;  %v1023_v28 = vsel %vm702_vm5, %v1021_v51, %v3245_v22  ;;  %v3248_v13 = vpop.permute.xlu1 %3247  ;;  %v3384_v22 = vld [vmem:[%s4481_s2 + $0x240] ss:$8 sps:$4 sm:$0xff]   ;;  %v3389_v31 = vld [vmem:[%s4481_s2 + $0x254] ss:$8 sps:$4 sm:$0xff]   ;;  %v3387_v43 = vld [vmem:[%s4481_s2 + $0x250] ss:$8 sps:$4 sm:$0xff]  }
 0x357   :  { %v3967_v16 = vpack.c.bf16 %v1023_v28, %v1022_v37  ;;  %v3250_v39 = vunpack.i.h.bf16 %v3248_v13  ;;  %v3249_v40 = vunpack.i.l.bf16 %v3248_v13  ;;  %v3392_v51 = vld [vmem:[%s4481_s2 + $0x264] ss:$8 sps:$4 sm:$0xff]   ;;  %v3393_v37 = vld [vmem:[%s4481_s2 + $0x270] ss:$8 sps:$4 sm:$0xff]   ;;  %v3396_v13 = vld [vmem:[%s4481_s2 + $0x280] ss:$8 sps:$4 sm:$0xff]  }
 0x358   :  { %v3398_v28 = vld [vmem:[%s4481_s2 + $0x284] ss:$8 sps:$4 sm:$0xff]  }
 0x359   :  { %1301 = vmatprep.mubr.bf16.mxu0 %v3967_v16  ;;  %v1016_v44 = vsel %vm702_vm5, %v1014_v42, %v3249_v40  ;;  %v1017_v46 = vsel %vm702_vm5, %v1015_v45, %v3250_v39  ;;  %v1029_v53 = vrot.slane %v3967_v16, 7  ;;  %v1037_v47 = vrot.slane %v3967_v16, 1  ;;  %v3401_v16 = vld [vmem:[%s4481_s2 + $0x294] ss:$8 sps:$4 sm:$0xff]   ;;  %v3404_v32 = vld [vmem:[%s4481_s2 + $0x2a4] ss:$8 sps:$4 sm:$0xff]  }
 0x35a   :  { %v3980_v50 = vpack.c.bf16 %v1017_v46, %v1016_v44  ;;  %v3402_v39 = vld [vmem:[%s4481_s2 + $0x2a0] ss:$8 sps:$4 sm:$0xff]   ;;  %v3407_v40 = vld [vmem:[%s4481_s2 + $0x2b4] ss:$8 sps:$4 sm:$0xff]   ;;  %v3405_v42 = vld [vmem:[%s4481_s2 + $0x2b0] ss:$8 sps:$4 sm:$0xff]  }
 0x35b   :  { %v3410_v45 = vld [vmem:[%s4481_s2 + $0x2c4] ss:$8 sps:$4 sm:$0xff]   ;;  %v3408_v44 = vld [vmem:[%s4481_s2 + $0x2c0] ss:$8 sps:$4 sm:$0xff]   ;;  %v3413_v46 = vld [vmem:[%s4481_s2 + $0x2d4] ss:$8 sps:$4 sm:$0xff]  }
 0x35c   :  { %1302 = vmatmul.mubr.bf16.vlgmr.msra.gmra.mrb[8].mxu0 %v3980_v50  ;;  %v1028_v17 = vrot.slane %v3980_v50, 7 }
 0x35d   :  { %1473 = vmatpush1.bf16.msra.mxu0 %v3324_v49  ;;  %2839 = vmatprep.mubr.msk.bf16.mxu0 %vm3983_vm9, %v1029_v53  ;;  %v3411_v49 = vld [vmem:[%s4481_s2 + $0x2d0] ss:$8 sps:$4 sm:$0xff]   ;;  %v3416_v53 = vld [vmem:[%s4481_s2 + $0x2e4] ss:$8 sps:$4 sm:$0xff]  }
 0x35e   :  { %1474 = vmatprep.subr.bf16.mxu0 %v3329_v23  ;;  %v3414_v23 = vld [vmem:[%s4481_s2 + $0x2e0] ss:$8 sps:$4 sm:$0xff]  }
 0x361   :  { %1475 = vmatpush1.bf16.msra.mxu0 %v3327_v27  ;;  %v3419_v27 = vld [vmem:[%s4481_s2 + $0x2f4] ss:$8 sps:$4 sm:$0xff]  }
 0x362   :  { %1476 = vmatprep.subr.bf16.mxu0 %v3332_v54  ;;  %v3417_v54 = vld [vmem:[%s4481_s2 + $0x2f0] ss:$8 sps:$4 sm:$0xff]  }
 0x365   :  { %1477 = vmatpush1.bf16.msra.mxu0 %v3330_v55  ;;  %v1036_v55 = vrot.slane %v3980_v50, 1 }
 0x366   :  { %1478 = vmatprep.subr.bf16.mxu0 %v3335_v29 }
 0x369   :  { %1479 = vmatpush1.bf16.msra.mxu0 %v3333_v25 }
 0x36a   :  { %1480 = vmatprep.subr.bf16.mxu0 %v3338_v57 }
 0x36d   :  { %1481 = vmatpush1.bf16.msra.mxu0 %v3336_v59 }
 0x36e   :  { %1482 = vmatprep.subr.bf16.mxu0 %v3341_v60 }
 0x371   :  { %1483 = vmatpush1.bf16.msra.mxu0 %v3339_v61 }
 0x372   :  { %1484 = vmatprep.subr.bf16.mxu0 %v3344_v62 }
 0x375   :  { %1485 = vmatpush1.bf16.msra.mxu0 %v3342_v63 }
 0x376   :  { %1486 = vmatprep.subr.bf16.mxu0 %v3347_v0 }
 0x379   :  { %1487 = vmatpush1.bf16.msra.mxu0 %v3345_v11 }
 0x37a   :  { %1488 = vmatprep.subr.bf16.mxu0 %v3350_v12 }
 0x37d   :  { %1489 = vmatpush1.bf16.msra.mxu0 %v3348_v1 }
 0x37e   :  { %1490 = vmatprep.subr.bf16.mxu0 %v3353_v56 }
 0x381   :  { %1491 = vmatpush1.bf16.msra.mxu0 %v3351_v18 }
 0x382   :  { %1492 = vmatprep.subr.bf16.mxu0 %v3356_v3 }
 0x385   :  { %1493 = vmatpush1.bf16.msra.mxu0 %v3354_v4 }
 0x386   :  { %1494 = vmatprep.subr.bf16.mxu0 %v3359_v6 }
 0x389   :  { %1495 = vmatpush1.bf16.msra.mxu0 %v3357_v7 }
 0x38a   :  { %1496 = vmatprep.subr.bf16.mxu0 %v3362_v21 }
 0x38d   :  { %1497 = vmatpush1.bf16.msra.mxu0 %v3360_v8 }
 0x38e   :  { %1498 = vmatprep.subr.bf16.mxu0 %v3365_v9 }
 0x391   :  { %1499 = vmatpush1.bf16.msra.mxu0 %v3363_v26 }
 0x392   :  { %1500 = vmatprep.subr.bf16.mxu0 %v3368_v2 }
 0x395   :  { %1501 = vmatpush1.bf16.msra.mxu0 %v3366_v5 }
 0x396   :  { %1502 = vmatprep.subr.bf16.mxu0 %v3371_v10 }
 0x399   :  { %1503 = vmatpush1.bf16.msra.mxu0 %v3369_v41 }
 0x39a   :  { %1708 = vmatprep.subr.bf16.mxu0 %v3374_v15 }
 0x39c   :  { %2841 = vmatmul.mubr.msk.bf16.vlgmr.msra.gmra.mrb[8].mxu0 %vm3983_vm9, %v1028_v17 }
 0x39d   :  { %1709 = vmatpush1.bf16.msra.mxu0 %v3372_v14  ;;  %2906 = vmatprep.mubr.msk.bf16.mxu0 %vm47_vm2, %v1037_v47 }
 0x39e   :  { %1710 = vmatprep.subr.bf16.mxu0 %v3377_v36 }
 0x3a1   :  { %1711 = vmatpush1.bf16.msra.mxu0 %v3375_v30 }
 0x3a2   :  { %1712 = vmatprep.subr.bf16.mxu0 %v3380_v34 }
 0x3a5   :  { %1713 = vmatpush1.bf16.msra.mxu0 %v3378_v48 }
 0x3a6   :  { %1714 = vmatprep.subr.bf16.mxu0 %v3383_v24 }
 0x3a9   :  { %1715 = vmatpush1.bf16.msra.mxu0 %v3381_v20 }
 0x3aa   :  { %1716 = vmatprep.subr.bf16.mxu0 %v3386_v58 }
 0x3ad   :  { %1717 = vmatpush1.bf16.msra.mxu0 %v3384_v22 }
 0x3ae   :  { %1718 = vmatprep.subr.bf16.mxu0 %v3389_v31 }
 0x3b1   :  { %1719 = vmatpush1.bf16.msra.mxu0 %v3387_v43 }
 0x3b2   :  { %1720 = vmatprep.subr.bf16.mxu0 %v3392_v51 }
 0x3b5   :  { %1721 = vmatpush1.bf16.msra.mxu0 %v3390_v33 }
 0x3b6   :  { %1722 = vmatprep.subr.bf16.mxu0 %v3395_v35 }
 0x3b9   :  { %1723 = vmatpush1.bf16.msra.mxu0 %v3393_v37 }
 0x3ba   :  { %1724 = vmatprep.subr.bf16.mxu0 %v3398_v28 }
 0x3bd   :  { %1725 = vmatpush1.bf16.msra.mxu0 %v3396_v13 }
 0x3be   :  { %1726 = vmatprep.subr.bf16.mxu0 %v3401_v16 }
 0x3c1   :  { %1727 = vmatpush1.bf16.msra.mxu0 %v3399_v38 }
 0x3c2   :  { %1728 = vmatprep.subr.bf16.mxu0 %v3404_v32 }
 0x3c5   :  { %1729 = vmatpush1.bf16.msra.mxu0 %v3402_v39 }
 0x3c6   :  { %1730 = vmatprep.subr.bf16.mxu0 %v3407_v40 }
 0x3c9   :  { %1731 = vmatpush1.bf16.msra.mxu0 %v3405_v42 }
 0x3ca   :  { %1732 = vmatprep.subr.bf16.mxu0 %v3410_v45 }
 0x3cd   :  { %1733 = vmatpush1.bf16.msra.mxu0 %v3408_v44 }
 0x3ce   :  { %1734 = vmatprep.subr.bf16.mxu0 %v3413_v46 }
 0x3d1   :  { %1735 = vmatpush1.bf16.msra.mxu0 %v3411_v49 }
 0x3d2   :  { %1736 = vmatprep.subr.bf16.mxu0 %v3416_v53 }
 0x3d5   :  { %1737 = vmatpush1.bf16.msra.mxu0 %v3414_v23 }
 0x3d6   :  { %1738 = vmatprep.subr.bf16.mxu0 %v3419_v27 }
 0x3d9   :  { %1739 = vmatpush1.bf16.msra.mxu0 %v3417_v54 }
 0x3dc   :  { %2907 = vmatmul.mubr.msk.bf16.vlgmr.msra.gmra.mrb[8].mxu0 %vm47_vm2, %v1036_v55 }
 0x4af   :  { %v4183_v29 = vpop.f32.mrb[8].mxu0 }
 0x4b0   :  { %v4185_v25 = vpop.f32.mrb[9].mxu0  ;;  %v1769_v59 = vmul.f32 %v4183_v29, %v4183_v29 }
 0x4b1   :  { %v4187_v57 = vpop.f32.mrb[10].mxu0  ;;  %v1770_v50 = vmul.f32 %v4185_v25, %v4185_v25 }
 0x4b2   :  { %v1755_v60 = vadd.f32 %v4187_v57, %v4183_v29  ;;  %v1771_v61 = vmul.f32 %v4187_v57, %v4187_v57  ;;  %v4195_v62 = vpop.f32.mrb[11].mxu0 }
 0x4b3   :  { %v1762_v63 = vadd.f32 %v4195_v62, %v4185_v25  ;;  %v1772_v0 = vmul.f32 %v4195_v62, %v4195_v62 }
 0x4b4   :  { %v1756_v11 = vrot.slane %v1755_v60, 4  ;;  %v1773_v12 = vadd.f32 %v1771_v61, %v1769_v59 }
 0x4b5   :  { %v1780_v1 = vadd.f32 %v1772_v0, %v1770_v50  ;;  %v1763_v3 = vrot.slane %v1762_v63, 4  ;;  %v1845_v0 = vld [vmem:[%s4484_s5 + $0x2] sm:$0x1] }
 0x4b6   :  { %v1757_v56 = vadd.f32 %v1756_v11, %v1755_v60  ;;  %v1774_v18 = vrot.slane %v1773_v12, 4 }
 0x4b7   :  { %v1781_v7 = vrot.slane %v1780_v1, 4  ;;  %v1764_v9 = vadd.f32 %v1763_v3, %v1762_v63 }
 0x4b8   :  { %v1758_v4 = vrot.slane %v1757_v56, 2  ;;  %v1775_v6 = vadd.f32 %v1774_v18, %v1773_v12 }
 0x4b9   :  { %v1782_v26 = vadd.f32 %v1781_v7, %v1780_v1  ;;  %v1765_v10 = vrot.slane %v1764_v9, 2  ;;  %v1846_v1 = vld [vmem:[%s4484_s5 + $0x3] sm:$0x1] }
 0x4ba   :  { %v1759_v21 = vadd.f32 %v1758_v4, %v1757_v56  ;;  %v1776_v8 = vrot.slane %v1775_v6, 2 }
 0x4bb   :  { %v1783_v14 = vrot.slane %v1782_v26, 2  ;;  %v1766_v36 = vadd.f32 %v1765_v10, %v1764_v9 }
 0x4bc   :  { %v1760_v2 = vrot.slane %v1759_v21, 1  ;;  %v1777_v5 = vadd.f32 %v1776_v8, %v1775_v6 }
 0x4bd   :  { %v1784_v47 = vadd.f32 %v1783_v14, %v1782_v26  ;;  %v1767_v30 = vrot.slane %v1766_v36, 1 }
 0x4be   :  { %v1761_v41 = vadd.f32 %v1760_v2, %v1759_v21  ;;  %v1778_v15 = vrot.slane %v1777_v5, 1 }
 0x4bf   :  { %v1785_v34 = vrot.slane %v1784_v47, 1  ;;  %v1768_v48 = vadd.f32 %v1767_v30, %v1766_v36 }
 0x4c0   :  { %1788 = vrot.lane.b32.xlu0 %v1761_v41, %s3490_s24  ;;  %v1779_v17 = vadd.f32 %v1778_v15, %v1777_v5 }
 0x4c1   :  { %v1786_v24 = vadd.f32 %v1785_v34, %v1784_v47 }
 0x4c2   :  { %1793 = vrot.lane.b32.xlu1 %v1779_v17, %s3490_s24 }
 0x4c4   :  { %1797 = vrot.lane.b32.xlu0 %v1761_v41, %s3489_s1 }
 0x4c6   :  { %1801 = vrot.lane.b32.xlu1 %v1779_v17, %s3489_s1 }
 0x4c8   :  { %1805 = vrot.lane.b32.xlu0 %v1761_v41, %s3491_s25 }
 0x4ca   :  { %1809 = vrot.lane.b32.xlu1 %v1779_v17, %s3491_s25 }
 0x4cc   :  { %1816 = vrot.lane.b32.xlu0 %v1768_v48, %s3490_s24 }
 0x4ce   :  { %1821 = vrot.lane.b32.xlu1 %v1786_v24, %s3490_s24 }
 0x4d0   :  { %1825 = vrot.lane.b32.xlu0 %v1768_v48, %s3489_s1 }
 0x4d2   :  { %1829 = vrot.lane.b32.xlu1 %v1786_v24, %s3489_s1 }
 0x4d4   :  { %1833 = vrot.lane.b32.xlu0 %v1768_v48, %s3491_s25 }
 0x4d6   :  { %1837 = vrot.lane.b32.xlu1 %v1786_v24, %s3491_s25 }
 0x532   :  { %v1789_v20 = vpop.permute.xlu0 %1788 }
 0x533   :  { %v1791_v31 = vadd.f32 %v1789_v20, %v1761_v41 }
 0x534   :  { %v1794_v58 = vpop.permute.xlu1 %1793 }
 0x535   :  { %v1796_v51 = vadd.f32 %v1794_v58, %v1779_v17 }
 0x536   :  { %v1798_v22 = vpop.permute.xlu0 %1797 }
 0x537   :  { %v1800_v33 = vadd.f32 %v1798_v22, %v1791_v31 }
 0x538   :  { %v1802_v43 = vpop.permute.xlu1 %1801 }
 0x539   :  { %v1804_v37 = vadd.f32 %v1802_v43, %v1796_v51 }
 0x53a   :  { %v1806_v35 = vpop.permute.xlu0 %1805 }
 0x53b   :  { %v1808_v28 = vadd.f32 %v1806_v35, %v1800_v33 }
 0x53c   :  { %v1810_v13 = vpop.permute.xlu1 %1809 }
 0x53d   :  { %v1812_v16 = vadd.f32 %v1810_v13, %v1804_v37  ;;  %v1813_v32 = vadd.f32 %v1808_v28, %v1768_v48 }
 0x53e   :  { %v1817_v38 = vpop.permute.xlu0 %1816 }
 0x53f   :  { %v1814_v40 = vadd.f32 %v1812_v16, %v1786_v24  ;;  %v1819_v45 = vadd.f32 %v1817_v38, %v1813_v32 }
 0x540   :  { %v1822_v39 = vpop.permute.xlu1 %1821 }
 0x541   :  { %v1824_v46 = vadd.f32 %v1822_v39, %v1814_v40 }
 0x542   :  { %v1826_v42 = vpop.permute.xlu0 %1825 }
 0x543   :  { %v1828_v49 = vadd.f32 %v1826_v42, %v1819_v45  ;;  %v3420_v45 = vld [vmem:[%s4482_s3 + $0x40] sm:$0xff]  }
 0x544   :  { %v1830_v44 = vpop.permute.xlu1 %1829 }
 0x545   :  { %v1832_v23 = vadd.f32 %v1830_v44, %v1824_v46 }
 0x546   :  { %v1834_v53 = vpop.permute.xlu0 %1833 }
 0x547   :  { %v1836_v27 = vadd.f32 %v1834_v53, %v1828_v49  ;;  %v3492_v49 = vmov 0.0  }
 0x548   :  { %v1838_v54 = vpop.permute.xlu1 %1837  ;;  %3040 = vmatprep.subr.bf16.mxu1 %v3492_v49  ;;  %3056 = vmatprep.mubr.msk.bf16.mxu1 %vm3493_vm10, %v3492_v49 }
 0x549   :  { %v1841_v55 = vmul.f32 0.0078125, %v1836_v27  ;;  %v1840_v59 = vadd.f32 %v1838_v54, %v1832_v23  ;;  %3041 = vmatpush3.bf16.msra.mxu1 %v3420_v45  ;;  %v3421_v27 = vld [vmem:[%s4482_s3 + $0x48] sm:$0xff]  }
 0x54a   :  { %3042 = vmatprep.subr.bf16.mxu1 %v3492_v49 }
 0x54b   :  { %v1843_v60 = vmul.f32 %v1841_v55, %v1841_v55  ;;  %v1842_v61 = vmul.f32 0.0078125, %v1840_v59  ;;  %v3423_v59 = vld [vmem:[%s4482_s3 + $0x58] sm:$0xff]  }
 0x54d   :  { %v1844_v50 = vsub.f32 %v1842_v61, %v1843_v60  ;;  %3043 = vmatpush3.bf16.msra.mxu1 %v3421_v27  ;;  %v3424_v60 = vld [vmem:[%s4482_s3 + $0x60] sm:$0xff]   ;;  %v3425_v61 = vld [vmem:[%s4482_s3 + $0x68] sm:$0xff]  }
 0x54e   :  { %3044 = vmatprep.subr.bf16.mxu1 %v3492_v49 }
 0x54f   :  { %v1847_v63 = vadd.f32 1e-05, %v1844_v50  ;;  %v3426_v50 = vld [vmem:[%s4482_s3 + $0x70] sm:$0xff]  }
 0x551   :  { %3458 = vrsqrt.f32 %v1847_v63  ;;  %v3427_v63 = vld [vmem:[%s4482_s3 + $0x78] sm:$0xff]  }
 0x55b   :  { %v3459_v11 = vpop.eup %3458 }
 0x55c   :  { %v1849_v12 = vmul.f32 %v3459_v11, %v1845_v0 }
 0x55e   :  { %1856 = vrot.lane.b32.xlu1 %v1849_v12, %s3489_s1  ;;  %1853 = vrot.lane.b32.xlu0 %v1849_v12, %s3491_s25  ;;  %v1850_v56 = vmul.f32 %v1849_v12, %v1841_v55  ;;  %v3422_v55 = vld [vmem:[%s4482_s3 + $0x50] sm:$0xff]  }
 0x55f   :  { %3045 = vmatpush3.bf16.msra.mxu1 %v3422_v55 }
 0x560   :  { %v1851_v18 = vsub.f32 %v1846_v1, %v1850_v56  ;;  %3046 = vmatprep.subr.bf16.mxu1 %v3492_v49 }
 0x562   :  { %1859 = vrot.lane.b32.xlu0 %v1849_v12, %s3490_s24  ;;  %1866 = vrot.lane.b32.xlu1 %v1851_v18, %s3491_s25 }
 0x563   :  { %3047 = vmatpush3.bf16.msra.mxu1 %v3423_v59 }
 0x564   :  { %3048 = vmatprep.subr.bf16.mxu1 %v3492_v49 }
 0x566   :  { %1869 = vrot.lane.b32.xlu0 %v1851_v18, %s3489_s1  ;;  %1872 = vrot.lane.b32.xlu1 %v1851_v18, %s3490_s24 }
 0x567   :  { %3049 = vmatpush3.bf16.msra.mxu1 %v3424_v60 }
 0x568   :  { %3050 = vmatprep.subr.bf16.mxu1 %v3492_v49 }
 0x56b   :  { %3051 = vmatpush3.bf16.msra.mxu1 %v3425_v61 }
 0x56c   :  { %3052 = vmatprep.subr.bf16.mxu1 %v3492_v49 }
 0x56f   :  { %3053 = vmatpush3.bf16.msra.mxu1 %v3426_v50 }
 0x570   :  { %3054 = vmatprep.subr.bf16.mxu1 %v3492_v49 }
 0x573   :  { %3055 = vmatpush3.bf16.msra.mxu1 %v3427_v63 }
 0x574   :  { %3060 = vmatprep.subr.bf16.mxu1 %v3492_v49 }
 0x5d0   :  { %v1857_v3 = vpop.permute.xlu1 %1856  ;;  %v1854_v4 = vpop.permute.xlu0 %1853 }
 0x5d1   :  { %v1862_v6 = vsel %vm698_vm3, %v1849_v12, %v1854_v4 }
 0x5d2   :  { %v1863_v7 = vsel %vm700_vm4, %v1862_v6, %v1857_v3 }
 0x5d4   :  { %v1860_v21 = vpop.permute.xlu0 %1859  ;;  %v1867_v8 = vpop.permute.xlu1 %1866 }
 0x5d5   :  { %v1864_v9 = vsel %vm702_vm5, %v1863_v7, %v1860_v21  ;;  %v1875_v2 = vsel %vm698_vm3, %v1851_v18, %v1867_v8  ;;  %v3428_v8 = vld [vmem:[%s4482_s3] sm:$0xff]  }
 0x5d6   :  { %v1881_v26 = vrot.slane %v1864_v9, %v3729_v19 }
 0x5d8   :  { %v1870_v5 = vpop.permute.xlu0 %1869  ;;  %v1873_v10 = vpop.permute.xlu1 %1872  ;;  %v1882_v15 = vmul.f32 %v1881_v26, %v4183_v29  ;;  %v1883_v17 = vmul.f32 %v1881_v26, %v4185_v25  ;;  %v1884_v36 = vmul.f32 %v1881_v26, %v4187_v57  ;;  %v1885_v47 = vmul.f32 %v1881_v26, %v4195_v62  ;;  %v3429_v26 = vld [vmem:[%s4482_s3 + $0x8] sm:$0xff]  }
 0x5d9   :  { %v1876_v41 = vsel %vm700_vm4, %v1875_v2, %v1870_v5  ;;  %v3430_v2 = vld [vmem:[%s4482_s3 + $0x10] sm:$0xff]   ;;  %v3431_v5 = vld [vmem:[%s4482_s3 + $0x18] sm:$0xff]  }
 0x5da   :  { %v1877_v14 = vsel %vm702_vm5, %v1876_v41, %v1873_v10  ;;  %v3432_v10 = vld [vmem:[%s4482_s3 + $0x20] sm:$0xff]   ;;  %v3433_v41 = vld [vmem:[%s4482_s3 + $0x28] sm:$0xff]  }
 0x5db   :  { %v1889_v30 = vrot.slane %v1877_v14, %v3729_v19  ;;  %v3435_v14 = vld [vmem:[%s4482_s3 + $0x38] sm:$0xff]  }
 0x5dd   :  { %v1890_v34 = vadd.f32 %v1889_v30, %v1882_v15  ;;  %v1891_v48 = vadd.f32 %v1889_v30, %v1883_v17  ;;  %v1892_v24 = vadd.f32 %v1889_v30, %v1884_v36  ;;  %v1893_v20 = vadd.f32 %v1889_v30, %v1885_v47  ;;  %v3434_v15 = vld [vmem:[%s4482_s3 + $0x30] sm:$0xff]   ;;  %v3436_v17 = vld [vmem:[%s4482_s3 + $0x80] sm:$0xff]   ;;  %v3437_v47 = vld [vmem:[%s4482_s3 + $0x88] sm:$0xff]  }
 0x5de   :  { %v3438_v30 = vld [vmem:[%s4482_s3 + $0x90] sm:$0xff]  }
 0x5df   :  { %v1894_v58 = vmax.f32 %v1890_v34, 0.0  ;;  %v1895_v22 = vmax.f32 %v1891_v48, 0.0  ;;  %v1896_v31 = vmax.f32 %v1892_v24, 0.0  ;;  %v1897_v43 = vmax.f32 %v1893_v20, 0.0  ;;  %v3440_v34 = vld [vmem:[%s4482_s3 + $0xa0] sm:$0xff]   ;;  %v3441_v48 = vld [vmem:[%s4482_s3 + $0xa8] sm:$0xff]  }
 0x5e0   :  { %v3442_v24 = vld [vmem:[%s4482_s3 + $0xb0] sm:$0xff]   ;;  %v3443_v20 = vld [vmem:[%s4482_s3 + $0xb8] sm:$0xff]  }
 0x5e1   :  { %v1900_v51 = vrot.slane %v1894_v58, 2  ;;  %v1901_v29 = vrot.slane %v1895_v22, 2  ;;  %v1908_v33 = vrot.slane %v1896_v31, 2  ;;  %v1909_v35 = vrot.slane %v1897_v43, 2 }
 0x5e3   :  { %v1904_v37 = vmax.f32 %v1894_v58, %v1900_v51  ;;  %v1905_v25 = vmax.f32 %v1895_v22, %v1901_v29  ;;  %v1912_v28 = vmax.f32 %v1896_v31, %v1908_v33  ;;  %v1913_v57 = vmax.f32 %v1897_v43, %v1909_v35 }
 0x5e5   :  { %v1916_v13 = vrot.slane %v1904_v37, 2  ;;  %v1917_v62 = vrot.slane %v1905_v25, 2  ;;  %v1922_v16 = vrot.slane %v1912_v28, 4  ;;  %v1923_v38 = vrot.slane %v1913_v57, 4 }
 0x5e6   :  { %v1926_v32 = vrot.slane %v1912_v28, 6  ;;  %v1927_v39 = vrot.slane %v1913_v57, 6 }
 0x5e7   :  { %v1930_v40 = vsel %vm901_vm6, %v1904_v37, %v1916_v13  ;;  %v1931_v42 = vsel %vm901_vm6, %v1905_v25, %v1917_v62 }
 0x5e8   :  { %v1932_v44 = vsel %vm906_vm7, %v1930_v40, %v1922_v16  ;;  %v1933_v46 = vsel %vm906_vm7, %v1931_v42, %v1923_v38 }
 0x5e9   :  { %v1934_v53 = vsel %vm911_vm8, %v1932_v44, %v1926_v32  ;;  %v1935_v23 = vsel %vm911_vm8, %v1933_v46, %v1927_v39 }
 0x5ea   :  { %v3251_v54 = vpack.i.bf16 %v1935_v23, %v1934_v53 }
 0x5ec   :  { %3252 = vrot.lane.b32.xlu0 %v3251_v54, %s3490_s24 }
 0x65e   :  { %v3253_v0 = vpop.permute.xlu0 %3252 }
 0x65f   :  { %v3255_v11 = vunpack.i.h.bf16 %v3253_v0  ;;  %v3254_v12 = vunpack.i.l.bf16 %v3253_v0 }
 0x661   :  { %v1945_v1 = vmax.f32 %v1935_v23, %v3255_v11  ;;  %v1940_v56 = vmax.f32 %v1934_v53, %v3254_v12  ;;  %v2329_v12 = vld [vmem:[%s4484_s5 + $0x4] sm:$0x1] }
 0x663   :  { %1951 = vrot.lane.b32.xlu0 %v1945_v1, %s3489_s1  ;;  %1947 = vrot.lane.b32.xlu1 %v1940_v56, %s3490_s24 }
 0x667   :  { %1954 = vrot.lane.b32.xlu1 %v1945_v1, %s3491_s25 }
 0x6d5   :  { %v1948_v18 = vpop.permute.xlu1 %1947  ;;  %v1952_v3 = vpop.permute.xlu0 %1951 }
 0x6d6   :  { %v1957_v4 = vsel %vm698_vm3, %v1940_v56, %v1948_v18  ;;  %v2330_v18 = vld [vmem:[%s4484_s5 + $0x5] sm:$0x1] }
 0x6d7   :  { %v1958_v6 = vsel %vm700_vm4, %v1957_v4, %v1952_v3 }
 0x6d9   :  { %v1955_v7 = vpop.permute.xlu1 %1954 }
 0x6da   :  { %v1959_v21 = vsel %vm702_vm5, %v1958_v6, %v1955_v7 }
 0x6db   :  { %v1960_v9 = vpack.c.bf16 %v1959_v21, %v1959_v21 }
 0x6dd   :  { %3057 = vmatmul.mubr.bf16.vlgmr.msra.gmra.mrb[16].mxu1 %v1960_v9  ;;  %v1962_v36 = vrot.slane %v1960_v9, 7  ;;  %v1966_v58 = vrot.slane %v1960_v9, 1 }
 0x6de   :  { %3061 = vmatpush3.bf16.msra.mxu1 %v3428_v8  ;;  %3076 = vmatprep.mubr.msk.bf16.mxu1 %vm3493_vm10, %v3492_v49 }
 0x6df   :  { %3062 = vmatprep.subr.bf16.mxu1 %v3492_v49 }
 0x6e2   :  { %3063 = vmatpush3.bf16.msra.mxu1 %v3429_v26 }
 0x6e3   :  { %3064 = vmatprep.subr.bf16.mxu1 %v3492_v49 }
 0x6e6   :  { %3065 = vmatpush3.bf16.msra.mxu1 %v3430_v2 }
 0x6e7   :  { %3066 = vmatprep.subr.bf16.mxu1 %v3492_v49 }
 0x6ea   :  { %3067 = vmatpush3.bf16.msra.mxu1 %v3431_v5 }
 0x6eb   :  { %3068 = vmatprep.subr.bf16.mxu1 %v3492_v49 }
 0x6ee   :  { %3069 = vmatpush3.bf16.msra.mxu1 %v3432_v10 }
 0x6ef   :  { %3070 = vmatprep.subr.bf16.mxu1 %v3492_v49 }
 0x6f2   :  { %3071 = vmatpush3.bf16.msra.mxu1 %v3433_v41 }
 0x6f3   :  { %3072 = vmatprep.subr.bf16.mxu1 %v3492_v49 }
 0x6f6   :  { %3073 = vmatpush3.bf16.msra.mxu1 %v3434_v15 }
 0x6f7   :  { %3074 = vmatprep.subr.bf16.mxu1 %v3492_v49 }
 0x6fa   :  { %3075 = vmatpush3.bf16.msra.mxu1 %v3435_v14 }
 0x6fb   :  { %3080 = vmatprep.subr.bf16.mxu1 %v3492_v49 }
 0x6fd   :  { %3077 = vmatmul.mubr.msk.bf16.vlgmr.msra.gmra.mrb[16].mxu1 %vm3983_vm9, %v1962_v36 }
 0x6fe   :  { %3081 = vmatpush3.bf16.msra.mxu1 %v3436_v17  ;;  %3096 = vmatprep.mubr.msk.bf16.mxu1 %vm3493_vm10, %v3492_v49 }
 0x6ff   :  { %3082 = vmatprep.subr.bf16.mxu1 %v3492_v49 }
 0x702   :  { %3083 = vmatpush3.bf16.msra.mxu1 %v3437_v47 }
 0x703   :  { %3084 = vmatprep.subr.bf16.mxu1 %v3492_v49 }
 0x706   :  { %3085 = vmatpush3.bf16.msra.mxu1 %v3438_v30 }
 0x707   :  { %3086 = vmatprep.subr.bf16.mxu1 %v3492_v49 }
 0x70a   :  { %3087 = vmatpush3.bf16.msra.mxu1 %v3439_v52  ;;  %v3444_v52 = vld [vmem:[%s4483_s4 + $0x20] sm:$0xff]  }
 0x70b   :  { %3088 = vmatprep.subr.bf16.mxu1 %v3492_v49 }
 0x70e   :  { %3089 = vmatpush3.bf16.msra.mxu1 %v3440_v34 }
 0x70f   :  { %3090 = vmatprep.subr.bf16.mxu1 %v3492_v49 }
 0x712   :  { %3091 = vmatpush3.bf16.msra.mxu1 %v3441_v48  ;;  %v3445_v48 = vld [vmem:[%s4483_s4 + $0x28] sm:$0xff]  }
 0x713   :  { %3092 = vmatprep.subr.bf16.mxu1 %v3492_v49 }
 0x716   :  { %3093 = vmatpush3.bf16.msra.mxu1 %v3442_v24 }
 0x717   :  { %3094 = vmatprep.subr.bf16.mxu1 %v3492_v49 }
 0x71a   :  { %3095 = vmatpush3.bf16.msra.mxu1 %v3443_v20 }
 0x71b   :  { %3100 = vmatprep.subr.bf16.mxu1 %v3492_v49 }
 0x71d   :  { %3097 = vmatmul.mubr.msk.bf16.vlgmr.msra.gmra.mrb[16].mxu1 %vm1967_vm11, %v1966_v58  ;;  %v3446_v58 = vld [vmem:[%s4483_s4 + $0x30] sm:$0xff]  }
 0x71e   :  { %3108 = vmatprep.mubr.msk.bf16.mxu1 %vm3493_vm10, %v3492_v49  ;;  %3101 = vmatpush3.bf16.msra.mxu1 %v3444_v52 }
 0x71f   :  { %3102 = vmatprep.subr.bf16.mxu1 %v3492_v49 }
 0x722   :  { %3103 = vmatpush3.bf16.msra.mxu1 %v3445_v48 }
 0x723   :  { %3104 = vmatprep.subr.bf16.mxu1 %v3492_v49 }
 0x726   :  { %3105 = vmatpush3.bf16.msra.mxu1 %v3446_v58 }
 0x727   :  { %3106 = vmatprep.subr.bf16.mxu1 %v3492_v49 }
 0x7f0   :  { %v4359_v22 = vpop.f32.mrb[16].mxu1 }
 0x7f1   :  { %v2286_v31 = vrot.slane %v4359_v22, 4  ;;  %v2292_v43 = vmul.f32 %v4359_v22, %v4359_v22  ;;  %v3098_v51 = vpop.f32.mrb[17].mxu1 }
 0x7f2   :  { %v2282_v29 = vpop.f32.mrb[18].mxu1 }
 0x7f3   :  { %v2287_v33 = vadd.f32 %v2286_v31, %v4359_v22  ;;  %v2293_v35 = vrot.slane %v2292_v43, 4  ;;  %v3099_v37 = vpop.f32.mrb[19].mxu1 }
 0x7f4   :  { %v3448_v37 = vld [vmem:[%s4483_s4] sm:$0xff]  }
 0x7f5   :  { %v2288_v25 = vrot.slane %v2287_v33, 2  ;;  %v2294_v28 = vadd.f32 %v2293_v35, %v2292_v43  ;;  %v3447_v43 = vld [vmem:[%s4483_s4 + $0x38] sm:$0xff]  }
 0x7f6   :  { %3107 = vmatpush3.bf16.msra.mxu1 %v3447_v43 }
 0x7f7   :  { %v2289_v57 = vadd.f32 %v2288_v25, %v2287_v33  ;;  %v2295_v13 = vrot.slane %v2294_v28, 2  ;;  %3112 = vmatprep.subr.bf16.mxu1 %v3492_v49 }
 0x7f9   :  { %v2290_v62 = vrot.slane %v2289_v57, 1  ;;  %v2296_v16 = vadd.f32 %v2295_v13, %v2294_v28  ;;  %v3449_v28 = vld [vmem:[%s4483_s4 + $0x8] sm:$0xff]   ;;  %v3451_v13 = vld [vmem:[%s4483_s4 + $0x18] sm:$0xff]  }
 0x7fb   :  { %v2291_v38 = vadd.f32 %v2290_v62, %v2289_v57  ;;  %v2297_v32 = vrot.slane %v2296_v16, 1  ;;  %v3450_v57 = vld [vmem:[%s4483_s4 + $0x10] sm:$0xff]  }
 0x7fd   :  { %2300 = vrot.lane.b32.xlu0 %v2291_v38, %s3490_s24  ;;  %v2298_v39 = vadd.f32 %v2297_v32, %v2296_v16  ;;  %v3452_v16 = vld [vmem:[%s4483_s4 + $0x40] sm:$0xff]   ;;  %v3453_v32 = vld [vmem:[%s4483_s4 + $0x48] sm:$0xff]  }
 0x7ff   :  { %2305 = vrot.lane.b32.xlu1 %v2298_v39, %s3490_s24 }
 0x801   :  { %2309 = vrot.lane.b32.xlu0 %v2291_v38, %s3489_s1 }
 0x803   :  { %2313 = vrot.lane.b32.xlu1 %v2298_v39, %s3489_s1 }
 0x805   :  { %2317 = vrot.lane.b32.xlu0 %v2291_v38, %s3491_s25 }
 0x807   :  { %2321 = vrot.lane.b32.xlu1 %v2298_v39, %s3491_s25 }
 0x86f   :  { %v2301_v40 = vpop.permute.xlu0 %2300 }
 0x870   :  { %v2303_v44 = vadd.f32 %v2301_v40, %v2291_v38  ;;  %v3455_v40 = vld [vmem:[%s4483_s4 + $0x58] sm:$0xff]  }
 0x871   :  { %v2306_v42 = vpop.permute.xlu1 %2305 }
 0x872   :  { %v2308_v53 = vadd.f32 %v2306_v42, %v2298_v39  ;;  %v3454_v39 = vld [vmem:[%s4483_s4 + $0x50] sm:$0xff]  }
 0x873   :  { %v2310_v45 = vpop.permute.xlu0 %2309 }
 0x874   :  { %v2312_v23 = vadd.f32 %v2310_v45, %v2303_v44 }
 0x875   :  { %v2314_v46 = vpop.permute.xlu1 %2313 }
 0x876   :  { %v2316_v54 = vadd.f32 %v2314_v46, %v2308_v53 }
 0x877   :  { %v2318_v27 = vpop.permute.xlu0 %2317 }
 0x878   :  { %v2320_v55 = vadd.f32 %v2318_v27, %v2312_v23 }
 0x879   :  { %v2322_v59 = vpop.permute.xlu1 %2321 }
 0x87a   :  { %v2325_v60 = vmul.f32 0.03125, %v2320_v55  ;;  %v2324_v61 = vadd.f32 %v2322_v59, %v2316_v54 }
 0x87c   :  { %v2327_v50 = vmul.f32 %v2325_v60, %v2325_v60  ;;  %v2326_v63 = vmul.f32 0.03125, %v2324_v61 }
 0x87e   :  { %v2328_v0 = vsub.f32 %v2326_v63, %v2327_v50 }
 0x880   :  { %v2331_v11 = vadd.f32 1e-05, %v2328_v0 }
 0x882   :  { %3460 = vrsqrt.f32 %v2331_v11 }
 0x88c   :  { %v3461_v1 = vpop.eup %3460 }
 0x88d   :  { %v2333_v56 = vmul.f32 %v3461_v1, %v2329_v12 }
 0x88f   :  { %2340 = vrot.lane.b32.xlu1 %v2333_v56, %s3489_s1  ;;  %2337 = vrot.lane.b32.xlu0 %v2333_v56, %s3491_s25  ;;  %v2334_v3 = vmul.f32 %v2333_v56, %v2325_v60 }
 0x891   :  { %v2335_v4 = vsub.f32 %v2330_v18, %v2334_v3 }
 0x893   :  { %2343 = vrot.lane.b32.xlu0 %v2333_v56, %s3490_s24  ;;  %2350 = vrot.lane.b32.xlu1 %v2335_v4, %s3491_s25 }
 0x897   :  { %2353 = vrot.lane.b32.xlu0 %v2335_v4, %s3489_s1  ;;  %2356 = vrot.lane.b32.xlu1 %v2335_v4, %s3490_s24 }
 0x901   :  { %v2341_v6 = vpop.permute.xlu1 %2340  ;;  %v2338_v7 = vpop.permute.xlu0 %2337 }
 0x902   :  { %v2346_v21 = vsel %vm698_vm3, %v2333_v56, %v2338_v7 }
 0x903   :  { %v2347_v8 = vsel %vm700_vm4, %v2346_v21, %v2341_v6 }
 0x905   :  { %v2344_v9 = vpop.permute.xlu0 %2343  ;;  %v2351_v26 = vpop.permute.xlu1 %2350 }
 0x906   :  { %v2348_v2 = vsel %vm702_vm5, %v2347_v8, %v2344_v9  ;;  %v2359_v10 = vsel %vm698_vm3, %v2335_v4, %v2351_v26 }
 0x907   :  { %v2365_v5 = vrot.slane %v2348_v2, %v3729_v19 }
 0x909   :  { %v2354_v41 = vpop.permute.xlu0 %2353  ;;  %v2357_v15 = vpop.permute.xlu1 %2356  ;;  %v2366_v36 = vmul.f32 %v2365_v5, %v4359_v22  ;;  %v2655_v5 = vld [vmem:[%s4484_s5 + $0x6] sm:$0x1] }
 0x90a   :  { %v2360_v14 = vsel %vm700_vm4, %v2359_v10, %v2354_v41 }
 0x90b   :  { %v2361_v17 = vsel %vm702_vm5, %v2360_v14, %v2357_v15  ;;  %v2656_v15 = vld [vmem:[%s4484_s5 + $0x7] sm:$0x1]  ;;  %s3494_s5 = smov [#allocation2]  }
 0x90c   :  { %v2370_v47 = vrot.slane %v2361_v17, %v3729_v19  ;;  %s2700_s19 = sshll.u32 %s3494_s5, 4  ;;  %s2701_s19 = int_to_ptr.vmem [resolvable:$true] %s2700_s19 }
 0x90d   :  { %p3469_p1 = scmp.lt.s32.totalorder %s2701_s19, %s2701_s19 }
 0x90e   :  { %v2371_v30 = vadd.f32 %v2370_v47, %v2366_v36 }
 0x910   :  { %v2372_v34 = vmax.f32 %v2371_v30, 0.0 }
 0x912   :  { %v2374_v24 = vrot.slane %v2372_v34, 2 }
 0x914   :  { %v2376_v20 = vmax.f32 %v2372_v34, %v2374_v24 }
 0x916   :  { %v2378_v22 = vrot.slane %v2376_v20, 2 }
 0x918   :  { %v2380_v31 = vsel %vm901_vm6, %v2376_v20, %v2378_v22 }
 0x919   :  { %2382 = vrot.lane.b32.xlu0 %v2380_v31, %s3490_s24 }
 0x98b   :  { %v2383_v51 = vpop.permute.xlu0 %2382 }
 0x98c   :  { %v2385_v29 = vmax.f32 %v2380_v31, %v2383_v51 }
 0x98e   :  { %2387 = vrot.lane.b32.xlu1 %v2385_v29, %s3490_s24 }
 0xa00   :  { %v2388_v33 = vpop.permute.xlu1 %2387 }
 0xa01   :  { %v2390_v35 = vsel %vm698_vm3, %v2385_v29, %v2388_v33 }
 0xa02   :  { %v2391_v25 = vpack.c.bf16 %v2390_v35, %v2390_v35 }
 0xa04   :  { %3109 = vmatmul.mubr.msk.bf16.vlgmr.msra.gmra.mrb[20].mxu1 %vm700_vm4, %v2391_v25  ;;  %v2393_v62 = vrot.slane %v2391_v25, 7  ;;  %v2396_v42 = vrot.slane %v2391_v25, 1 }
 0xa05   :  { %3113 = vmatpush3.bf16.msra.mxu1 %v3448_v37  ;;  %3120 = vmatprep.mubr.msk.bf16.mxu1 %vm3493_vm10, %v3492_v49 }
 0xa06   :  { %3114 = vmatprep.subr.bf16.mxu1 %v3492_v49  ;;  %v2395_v38 = vsel %vm39_vm1, 0, %v2393_v62  ;;  %v2398_v45 = vsel %vm39_vm1, %v2396_v42, 0 }
 0xa09   :  { %3115 = vmatpush3.bf16.msra.mxu1 %v3449_v28 }
 0xa0a   :  { %3116 = vmatprep.subr.bf16.mxu1 %v3492_v49 }
 0xa0d   :  { %3117 = vmatpush3.bf16.msra.mxu1 %v3450_v57 }
 0xa0e   :  { %3118 = vmatprep.subr.bf16.mxu1 %v3492_v49 }
 0xa11   :  { %3119 = vmatpush3.bf16.msra.mxu1 %v3451_v13 }
 0xa12   :  { %3124 = vmatprep.subr.bf16.mxu1 %v3492_v49 }
 0xa14   :  { %3121 = vmatmul.mubr.msk.bf16.vlgmr.msra.gmra.mrb[20].mxu1 %vm700_vm4, %v2395_v38 }
 0xa15   :  { %3125 = vmatpush3.bf16.msra.mxu1 %v3452_v16  ;;  %3132 = vmatprep.mubr.msk.bf16.mxu1 %vm3493_vm10, %v3492_v49 }
 0xa16   :  { %3126 = vmatprep.subr.bf16.mxu1 %v3492_v49 }
 0xa19   :  { %3127 = vmatpush3.bf16.msra.mxu1 %v3453_v32 }
 0xa1a   :  { %3128 = vmatprep.subr.bf16.mxu1 %v3492_v49 }
 0xa1d   :  { %3129 = vmatpush3.bf16.msra.mxu1 %v3454_v39 }
 0xa1e   :  { %3130 = vmatprep.subr.bf16.mxu1 %v3492_v49 }
 0xa21   :  { %3131 = vmatpush3.bf16.msra.mxu1 %v3455_v40 }
 0xa24   :  { %3133 = vmatmul.mubr.msk.bf16.vlgmr.msra.gmra.mrb[20].mxu1 %vm700_vm4, %v2398_v45 }
 0xaf7   :  { %v2618_v44 = vpop.f32.mrb[20].mxu1 }
 0xaf8   :  { %v2626_v46 = vsel %vm2625_vm12, %v2618_v44, 0.0  ;;  %v2633_v53 = vmul.f32 %v2618_v44, %v2618_v44  ;;  %v3134_v23 = vpop.f32.mrb[21].mxu1 }
 0xaf9   :  { %v2627_v27 = vrot.slane %v2626_v46, 4  ;;  %v2621_v54 = vpop.f32.mrb[22].mxu1 }
 0xafa   :  { %v2634_v55 = vsel %vm2625_vm12, %v2633_v53, 0.0  ;;  %v3135_v59 = vpop.f32.mrb[23].mxu1 }
 0xafb   :  { %v2628_v60 = vadd.f32 %v2627_v27, %v2626_v46  ;;  %v2635_v61 = vrot.slane %v2634_v55, 4 }
 0xafd   :  { %v2629_v50 = vrot.slane %v2628_v60, 2  ;;  %v2636_v63 = vadd.f32 %v2635_v61, %v2634_v55 }
 0xaff   :  { %v2630_v49 = vadd.f32 %v2629_v50, %v2628_v60  ;;  %v2637_v0 = vrot.slane %v2636_v63, 2 }
 0xb01   :  { %v2631_v11 = vrot.slane %v2630_v49, 1  ;;  %v2638_v12 = vadd.f32 %v2637_v0, %v2636_v63 }
 0xb03   :  { %v2632_v1 = vadd.f32 %v2631_v11, %v2630_v49  ;;  %v2639_v56 = vrot.slane %v2638_v12, 1 }
 0xb05   :  { %2642 = vrot.lane.b32.xlu0 %v2632_v1, %s3490_s24  ;;  %v2640_v18 = vadd.f32 %v2639_v56, %v2638_v12 }
 0xb07   :  { %2647 = vrot.lane.b32.xlu1 %v2640_v18, %s3490_s24 }
 0xb77   :  { %v2643_v3 = vpop.permute.xlu0 %2642 }
 0xb78   :  { %v2645_v4 = vadd.f32 %v2643_v3, %v2632_v1 }
 0xb79   :  { %v2648_v6 = vpop.permute.xlu1 %2647 }
 0xb7a   :  { %v2651_v7 = vmul.f32 0.125, %v2645_v4  ;;  %v2650_v21 = vadd.f32 %v2648_v6, %v2640_v18 }
 0xb7c   :  { %v2653_v8 = vmul.f32 %v2651_v7, %v2651_v7  ;;  %v2652_v9 = vmul.f32 0.125, %v2650_v21 }
 0xb7e   :  { %v2654_v26 = vsub.f32 %v2652_v9, %v2653_v8 }
 0xb80   :  { %v2657_v2 = vadd.f32 1e-05, %v2654_v26 }
 0xb82   :  { %3462 = vrsqrt.f32 %v2657_v2 }
 0xb8c   :  { %v3463_v10 = vpop.eup %3462 }
 0xb8d   :  { %v2659_v41 = vmul.f32 %v3463_v10, %v2655_v5 }
 0xb8f   :  { %2663 = vrot.lane.b32.xlu0 %v2659_v41, %s3491_s25  ;;  %v2660_v14 = vmul.f32 %v2659_v41, %v2651_v7 }
 0xb91   :  { %v2661_v17 = vsub.f32 %v2656_v15, %v2660_v14 }
 0xb93   :  { %2668 = vrot.lane.b32.xlu1 %v2661_v17, %s3491_s25  ;;  %s3464_s25 = scalar_lea.vmem %s2701_s19, 32 }
 0xb94   :  { %p3465_p0 = scmp.ne.s32.totalorder %s2701_s19, %s3464_s25  ;;  %p3470_p2 = scmp.lt.s32.totalorder %s3464_s25, %s3464_s25 }
 0xb96   :  { %p3471_p3 = por %p3470_p2, %p3469_p1 }
 0xb98   :  { %p3472_p4 = pnand %p3471_p3, %p3465_p0 }
 0xc01   :  { %v2664_v36 = vpop.permute.xlu0 %2663 }
 0xc02   :  { %v2666_v47 = vsel %vm698_vm3, %v2659_v41, %v2664_v36 }
 0xc03   :  { %v2675_v30 = vrot.slane %v2666_v47, %v3729_v19 }
 0xc05   :  { %v2669_v52 = vpop.permute.xlu1 %2668  ;;  %v2676_v48 = vmul.f32 %v2675_v30, %v2618_v44 }
 0xc06   :  { %v2671_v34 = vsel %vm698_vm3, %v2661_v17, %v2669_v52 }
 0xc07   :  { %v2680_v24 = vrot.slane %v2671_v34, %v3729_v19 }
 0xc09   :  { %v2681_v20 = vadd.f32 %v2680_v24, %v2676_v48 }
 0xc0b   :  { %v2682_v58 = vmax.f32 %v2681_v20, 0.0 }
 0xc0d   :  { %v2684_v22 = vrot.slane %v2682_v58, 2 }
 0xc0f   :  { %v2686_v31 = vmax.f32 %v2682_v58, %v2684_v22 }
 0xc11   :  { %2688 = vrot.lane.b32.xlu0 %v2686_v31, %s3490_s24 }
 0xc83   :  { %v2689_v43 = vpop.permute.xlu0 %2688 }
 0xc84   :  { %v2691_v51 = vmax.f32 %v2686_v31, %v2689_v43 }
 0xc86   :  { %2693 = vst.msk [vmem:[#allocation2] sm:$0x3] %vm2692_vm13, %v2691_v51 }
 0xc87   :  { %3475 = shalt.err (!%p3472_p4)
}
 0xc88   :  { %s3476_s22 = scalar_lea.hbm %s4485_s6, 32 }
 0xc89   :  { %p3477_p5 = scmp.ne.s32.totalorder %s4485_s6, %s3476_s22  ;;  %p3480_p6 = scmp.lt.u32.totalorder %s3476_s22, %s4485_s6 }
 0xc8b   :  { %p3482_p7 = pnand %p3480_p6, %p3477_p5 }
 0xc8d   :  { %3485 = shalt.err (!%p3482_p7)
}
 0xc8e   :  { %2703 = dma.vmem_to_hbm [thread:$0]  %s2701_s19, 32, %s4485_s6, [#allocation3]  }
 0xc8f   :  { %3486 = dma.done.wait [#allocation3], 32  }
 0xc90   :  { %3487 = vsyncadd [#allocation3], 4294967264 }
 0xc91   :  { %2707 = vsyncpa [#allocation3], 1 }

</bundles_post_ra>
